<compile_context>
chip_gen: v5e
topology: v5e:2x2
jax: 0.10.0
libtpu: 0.0.40
codegen_flags: <defaults>
</compile_context>

<pallas_src>
import functools

import jax
import jax.numpy as jnp
from jax.experimental import pallas as pl
from jax.experimental.pallas import tpu as pltpu

BN_EPS = 1e-5


# ----------------------------------------------------------------------------- fused chain kernel

def _fused_chain_kernel(x_ref, W1_ref, W2_ref, g1_ref, bt1_ref, g2_ref, bt2_ref,
                        gd_ref, btd_ref, o_ref, pad_ref, carry_ref,
                        *, N, H, W, Cout, eps):
    b = pl.program_id(0)
    NH = N * H
    WC = W * Cout
    inv_m = 1.0 / float(N * H * W)

    @pl.when(b == 0)
    def _():
        # One-time init: zero the H-halo scratch (rows 0 and H+1 stay zero for the
        # whole chain) and seed the carried activation with the padded input slab.
        pad_ref[...] = jnp.zeros_like(pad_ref)
        carry_ref[...] = x_ref[...]

    xin = carry_ref[...]                                     # (NH, WC) f32 block input

    def shifted_lhs():
        # im2row along H: three row-shifted bf16 views concatenated along K
        # -> a single wide MXU matmul instead of 3 accumulating ones.
        parts = [pad_ref[:, pl.ds(kh, H), :].reshape(NH, WC).astype(jnp.bfloat16)
                 for kh in range(3)]
        return jnp.concatenate(parts, axis=-1)               # (NH, 3*WC) bf16

    def bn(acc, gamma_col, beta_col):
        # Train-mode BatchNorm on a lane-dense slab: per-channel stats over (N,H,W)
        # via a sublane sum + log2(W)-step cyclic lane roll-add tree (all f32, XLU).
        # The reduced stats end up replicated per W-group -> no broadcast-back.
        s = jnp.concatenate([jnp.sum(acc, axis=0, keepdims=True),
                             jnp.sum(acc * acc, axis=0, keepdims=True)], axis=0)
        shift = Cout
        while shift < WC:
            s = s + pltpu.roll(s, shift=shift, axis=1)
            shift *= 2
        mean = s[0:1, :] * inv_m
        var = s[1:2, :] * inv_m - mean * mean                # biased (train-mode) var
        scale = gamma_col * jax.lax.rsqrt(var + eps)
        return acc * scale + (beta_col - mean * scale)

    # ---- conv1 (+ fused downsample columns) + BN + ReLU ----------------------
    # Conv biases omitted: a per-channel bias cancels exactly under train-mode BN.
    pad_ref[:, pl.ds(1, H), :] = xin.reshape(N, H, WC)
    out1 = jnp.dot(shifted_lhs(), W1_ref[...],
                   preferred_element_type=jnp.float32)        # (NH, 2*WC)
    h = jnp.maximum(bn(out1[:, :WC], g1_ref[...], bt1_ref[...]), 0.0)

    # ---- conv2 + BN ----------------------------------------------------------
    pad_ref[:, pl.ds(1, H), :] = h.reshape(N, H, WC)
    acc2 = jnp.dot(shifted_lhs(), W2_ref[...],
                   preferred_element_type=jnp.float32)        # (NH, WC)
    y = bn(acc2, g2_ref[...], bt2_ref[...])

    # ---- residual, add, ReLU -------------------------------------------------
    # Block 0: BN(1x1-downsample(x)) comes from the extra columns of the conv1
    # matmul.  Later blocks: identity residual, taken exactly (f32) from the carry.
    res0 = bn(out1[:, WC:], gd_ref[...], btd_ref[...])
    sel = (b == 0).astype(jnp.float32)
    res = sel * res0 + (1.0 - sel) * xin

    out = jnp.maximum(y + res, 0.0)
    carry_ref[...] = out
    o_ref[...] = out


# ----------------------------------------------------------------------------- wrapper

def chain_apply(x_nchw, folded):
    """Fused Pallas forward for the whole chain.  NCHW in/out (PyTorch convention)."""
    N, Cin, H, W = x_nchw.shape
    num_blocks = folded["W1"].shape[0]
    WC = folded["W2"].shape[-1]
    Cout = WC // W
    assert Cin <= Cout, "fused uniform-K path assumes input_channel <= ouput_channel"
    assert W & (W - 1) == 0, "roll-tree BN reduce assumes W is a power of two"
    NH = N * H
    K3 = 3 * WC

    # NCHW -> NHWC, zero-pad channels to Cout (uniform K), lane-dense slab.
    x = jnp.transpose(x_nchw, (0, 2, 3, 1))
    if Cin < Cout:
        x = jnp.pad(x, ((0, 0), (0, 0), (0, 0), (0, Cout - Cin)))
    x_slab = x.reshape(NH, WC)

    kernel = functools.partial(_fused_chain_kernel, N=N, H=H, W=W, Cout=Cout,
                               eps=BN_EPS)
    wspec = lambda b: (b, 0, 0)
    out_slab = pl.pallas_call(
        kernel,
        out_shape=jax.ShapeDtypeStruct((NH, WC), jnp.float32),
        grid=(num_blocks,),
        in_specs=[
            pl.BlockSpec((NH, WC), lambda b: (0, 0)),          # padded input slab
            pl.BlockSpec((None, K3, 2 * WC), wspec),           # conv1 (+downsample) wts
            pl.BlockSpec((None, K3, WC), wspec),               # conv2 weights
            pl.BlockSpec((None, 1, WC), wspec),                # bn1 gamma (column form)
            pl.BlockSpec((None, 1, WC), wspec),                # bn1 beta
            pl.BlockSpec((None, 1, WC), wspec),                # bn2 gamma
            pl.BlockSpec((None, 1, WC), wspec),                # bn2 beta
            pl.BlockSpec((1, WC), lambda b: (0, 0)),           # downsample-bn gamma
            pl.BlockSpec((1, WC), lambda b: (0, 0)),           # downsample-bn beta
        ],
        out_specs=pl.BlockSpec((NH, WC), lambda b: (0, 0)),
        scratch_shapes=[pltpu.VMEM((N, H + 2, WC), jnp.float32),   # H-halo padded slab
                        pltpu.VMEM((NH, WC), jnp.float32)],        # carried activation
        compiler_params=pltpu.CompilerParams(
            dimension_semantics=("arbitrary",)),    # sequential dependency via carry
    )(x_slab, folded["W1"], folded["W2"], folded["g1"], folded["bt1"],
      folded["g2"], folded["bt2"], folded["gd"], folded["btd"])

    return jnp.transpose(out_slab.reshape(N, H, W, Cout), (0, 3, 1, 2))


# ----------------------------------------------------------------------------- param folding

def _fold_conv3x3_stacked(w_hwio, W, cin_pad):
    """(3,3,Cin,Cout) HWIO -> (3*W*cin_pad, W*Cout) stacked block-banded matrix.

    Row block kh corresponds to the H-tap kh (input row h+kh-1); kw taps and the
    width zero-padding are folded into the band structure.
    """
    cin, cout = w_hwio.shape[2], w_hwio.shape[3]
    if cin < cin_pad:
        w_hwio = jnp.pad(w_hwio, ((0, 0), (0, 0), (0, cin_pad - cin), (0, 0)))
    mats = []
    for kh in range(3):
        B = jnp.zeros((W * cin_pad, W * cout), jnp.float32)
        for kw in range(3):
            S = jnp.eye(W, W, k=1 - kw, dtype=jnp.float32)   # S[win, wout]
            B = B + jnp.kron(S, w_hwio[kh, kw])
        mats.append(B)
    return jnp.concatenate(mats, axis=0)


def fold_params(params, W):
    """Fold module-style params into stacked kernel operands (done once, off the hot path)."""
    cout = params["blocks"][0]["w1"].shape[-1]
    cp = cout                                # padded input channels -> uniform K
    W1s, W2s, g1s, bt1s, g2s, bt2s = [], [], [], [], [], []
    for i, bp in enumerate(params["blocks"]):
        B1 = _fold_conv3x3_stacked(bp["w1"], W, cp)          # (3*W*cp, W*cout)
        B2 = _fold_conv3x3_stacked(bp["w2"], W, cout)        # (3*W*cout, W*cout)
        R = jnp.zeros((3 * W * cp, W * cout), jnp.float32)   # residual columns
        if i == 0:
            ds_w = params["downsample"]["w"]                 # (cin, cout), 1x1, no bias
            ds_w = jnp.pad(ds_w, ((0, cp - ds_w.shape[0]), (0, 0)))
            D = jnp.kron(jnp.eye(W, dtype=jnp.float32), ds_w)
            R = R.at[W * cp:2 * W * cp, :].set(D)            # only the center (kh=1) tap
        W1s.append(jnp.concatenate([B1, R], axis=1))         # (3*W*cp, 2*W*cout)
        W2s.append(B2)
        g1s.append(jnp.tile(bp["g1"], W).reshape(1, W * cout))
        bt1s.append(jnp.tile(bp["bt1"], W).reshape(1, W * cout))
        g2s.append(jnp.tile(bp["g2"], W).reshape(1, W * cout))
        bt2s.append(jnp.tile(bp["bt2"], W).reshape(1, W * cout))
    ds = params["downsample"]
    return dict(
        W1=jnp.stack(W1s).astype(jnp.bfloat16),
        W2=jnp.stack(W2s).astype(jnp.bfloat16),
        g1=jnp.stack(g1s), bt1=jnp.stack(bt1s),
        g2=jnp.stack(g2s), bt2=jnp.stack(bt2s),
        gd=jnp.tile(ds["g"], W).reshape(1, W * cout),
        btd=jnp.tile(ds["bt"], W).reshape(1, W * cout),
    )


def init_params(key, cin, cout, num_blocks):
    """Deterministic synthetic parameters (same shapes as the PyTorch module)."""
    def nrm(k, shape, scale=0.1):
        return scale * jax.random.normal(k, shape, jnp.float32)

    keys = iter(jax.random.split(key, 8 * num_blocks + 4))
    blocks = []
    for blk in range(num_blocks):
        c_in = cin if blk == 0 else cout
        blocks.append(dict(
            w1=nrm(next(keys), (3, 3, c_in, cout)),
            b1=nrm(next(keys), (cout,), 0.05),
            g1=1.0 + nrm(next(keys), (cout,), 0.05),
            bt1=nrm(next(keys), (cout,), 0.05),
            w2=nrm(next(keys), (3, 3, cout, cout)),
            b2=nrm(next(keys), (cout,), 0.05),
            g2=1.0 + nrm(next(keys), (cout,), 0.05),
            bt2=nrm(next(keys), (cout,), 0.05),
        ))
    downsample = dict(
        w=nrm(next(keys), (cin, cout)),          # 1x1 conv, bias=False
        g=1.0 + nrm(next(keys), (cout,), 0.05),
        bt=nrm(next(keys), (cout,), 0.05),
    )
    return dict(blocks=blocks, downsample=downsample)


# ----------------------------------------------------------------------------- pure-JAX reference

def _ref_conv3x3(x, w, b):
    y = jax.lax.conv_general_dilated(
        x, w, window_strides=(1, 1), padding=((1, 1), (1, 1)),
        dimension_numbers=("NHWC", "HWIO", "NHWC"),
        precision=jax.lax.Precision.HIGHEST)
    return y + b.reshape(1, 1, 1, -1)


def _ref_bn(y, g, bt, eps=BN_EPS):
    mean = jnp.mean(y, axis=(0, 1, 2), keepdims=True)
    var = jnp.mean((y - mean) ** 2, axis=(0, 1, 2), keepdims=True)
    return (y - mean) * jax.lax.rsqrt(var + eps) * g.reshape(1, 1, 1, -1) \
        + bt.reshape(1, 1, 1, -1)


def chain_forward_ref(x_nchw, params):
    x = jnp.transpose(x_nchw, (0, 2, 3, 1))
    ds = params["downsample"]
    for i, bp in enumerate(params["blocks"]):
        if i == 0:
            r = jnp.einsum("nhwc,cd->nhwd", x, ds["w"],
                           precision=jax.lax.Precision.HIGHEST)
            residual = _ref_bn(r, ds["g"], ds["bt"])
        else:
            residual = x
        h = jnp.maximum(_ref_bn(_ref_conv3x3(x, bp["w1"], bp["b1"]),
                                bp["g1"], bp["bt1"]), 0.0)
        o = _ref_bn(_ref_conv3x3(h, bp["w2"], bp["b2"]), bp["g2"], bp["bt2"])
        x = jnp.maximum(o + residual, 0.0)
    return jnp.transpose(x, (0, 3, 1, 2))


# ----------------------------------------------------------------------------- main

if __name__ == "__main__":
    N, Cin, H, W = 2, 4, 16, 16
    Cout, num_blocks = 8, 2          # W * Cout = 128 -> fully lane-dense slabs

    key = jax.random.PRNGKey(0)
    kx, kp = jax.random.split(key)
    x_nchw = jax.random.normal(kx, (N, Cin, H, W), jnp.float32)
    params = init_params(kp, Cin, Cout, num_blocks)

    # Fold weights once (off the per-call path), jit the fused forward.
    folded = fold_params(params, W)
    fwd = jax.jit(chain_apply)
    out = jax.block_until_ready(fwd(x_nchw, folded))

    ref = chain_forward_ref(x_nchw, params)
    assert out.shape == (N, Cout, H, W), out.shape
    assert bool(jnp.all(jnp.isfinite(out)))
    max_err = float(jnp.max(jnp.abs(out - ref)))
    # bf16 matmul operands (f32 accumulate) vs f32-HIGHEST reference (with conv biases).
    assert max_err < 5e-2, f"mismatch vs reference, max abs err = {max_err}"

    print("KERNEL_OK")
</pallas_src>

<mosaic_0001>
module attributes {stable_mosaic.version = 11 : i64} {
  func.func @_fused_chain_kernel(%arg0: i32, %arg1: memref<32x128xf32, #tpu.memory_space<vmem>>, %arg2: memref<1x384x256xbf16, #tpu.memory_space<vmem>>, %arg3: memref<1x384x128xbf16, #tpu.memory_space<vmem>>, %arg4: memref<1x1x128xf32, #tpu.memory_space<vmem>>, %arg5: memref<1x1x128xf32, #tpu.memory_space<vmem>>, %arg6: memref<1x1x128xf32, #tpu.memory_space<vmem>>, %arg7: memref<1x1x128xf32, #tpu.memory_space<vmem>>, %arg8: memref<1x128xf32, #tpu.memory_space<vmem>>, %arg9: memref<1x128xf32, #tpu.memory_space<vmem>>, %arg10: memref<32x128xf32, #tpu.memory_space<vmem>>, %arg11: memref<2x18x128xf32, #tpu.memory_space<vmem>>, %arg12: memref<32x128xf32, #tpu.memory_space<vmem>>) attributes {dimension_semantics = [#tpu.dimension_semantics<arbitrary>], iteration_bounds = array<i64: 2>, scalar_prefetch = 0 : i64, scratch_operands = 2 : i64, tpu.core_type = #tpu.core_type<tc>, window_params = [{pipeline_mode = #tpu.pipeline_mode<synchronous>, transform_indices = @transform_0, window_bounds = array<i64: 32, 128>}, {transform_indices = @transform_1, window_bounds = array<i64: 1, 384, 256>}, {transform_indices = @transform_2, window_bounds = array<i64: 1, 384, 128>}, {transform_indices = @transform_3, window_bounds = array<i64: 1, 1, 128>}, {transform_indices = @transform_4, window_bounds = array<i64: 1, 1, 128>}, {transform_indices = @transform_5, window_bounds = array<i64: 1, 1, 128>}, {transform_indices = @transform_6, window_bounds = array<i64: 1, 1, 128>}, {pipeline_mode = #tpu.pipeline_mode<synchronous>, transform_indices = @transform_7, window_bounds = array<i64: 1, 128>}, {pipeline_mode = #tpu.pipeline_mode<synchronous>, transform_indices = @transform_8, window_bounds = array<i64: 1, 128>}, {pipeline_mode = #tpu.pipeline_mode<synchronous>, transform_indices = @transform_9, window_bounds = array<i64: 32, 128>}]} {
    %c0_i32 = arith.constant 0 : i32
    %0 = arith.cmpi eq, %arg0, %c0_i32 : i32
    %1 = arith.extui %0 : i1 to i32
    %c0_i32_0 = arith.constant 0 : i32
    %2 = arith.cmpi ne, %1, %c0_i32_0 : i32
    scf.if %2 {
      %cst_78 = arith.constant 0.000000e+00 : f32
      %158 = vector.broadcast %cst_78 : f32 to vector<2x18x128xf32>
      %c0_79 = arith.constant 0 : index
      %c0_80 = arith.constant 0 : index
      %c0_81 = arith.constant 0 : index
      %159 = vector.load %arg11[%c0_79, %c0_80, %c0_81] : memref<2x18x128xf32, #tpu.memory_space<vmem>>, vector<2x18x128xf32>
      tpu.vector_store %arg11[%c0_79, %c0_80, %c0_81], %158 {strides = array<i32>} : memref<2x18x128xf32, #tpu.memory_space<vmem>>, vector<2x18x128xf32>,
      %c0_82 = arith.constant 0 : index
      %c0_83 = arith.constant 0 : index
      %160 = vector.load %arg1[%c0_82, %c0_83] : memref<32x128xf32, #tpu.memory_space<vmem>>, vector<32x128xf32>
      %c0_84 = arith.constant 0 : index
      %c0_85 = arith.constant 0 : index
      %161 = vector.load %arg12[%c0_84, %c0_85] : memref<32x128xf32, #tpu.memory_space<vmem>>, vector<32x128xf32>
      tpu.vector_store %arg12[%c0_84, %c0_85], %160 {strides = array<i32>} : memref<32x128xf32, #tpu.memory_space<vmem>>, vector<32x128xf32>,
    } else {
    }
    %c0 = arith.constant 0 : index
    %c0_1 = arith.constant 0 : index
    %3 = vector.load %arg12[%c0, %c0_1] : memref<32x128xf32, #tpu.memory_space<vmem>>, vector<32x128xf32>
    %4 = vector.shape_cast %3 : vector<32x128xf32> to vector<2x16x128xf32>
    %c0_2 = arith.constant 0 : index
    %c1 = arith.constant 1 : index
    %c0_3 = arith.constant 0 : index
    %5 = vector.load %arg11[%c0_2, %c1, %c0_3] : memref<2x18x128xf32, #tpu.memory_space<vmem>>, vector<2x16x128xf32>
    tpu.vector_store %arg11[%c0_2, %c1, %c0_3], %4 {strides = array<i32>} : memref<2x18x128xf32, #tpu.memory_space<vmem>>, vector<2x16x128xf32>,
    %c0_4 = arith.constant 0 : index
    %c0_5 = arith.constant 0 : index
    %c0_6 = arith.constant 0 : index
    %6 = vector.load %arg11[%c0_4, %c0_5, %c0_6] : memref<2x18x128xf32, #tpu.memory_space<vmem>>, vector<2x16x128xf32>
    %7 = vector.shape_cast %6 : vector<2x16x128xf32> to vector<32x128xf32>
    %8 = arith.truncf %7 : vector<32x128xf32> to vector<32x128xbf16>
    %c0_7 = arith.constant 0 : index
    %c1_8 = arith.constant 1 : index
    %c0_9 = arith.constant 0 : index
    %9 = vector.load %arg11[%c0_7, %c1_8, %c0_9] : memref<2x18x128xf32, #tpu.memory_space<vmem>>, vector<2x16x128xf32>
    %10 = vector.shape_cast %9 : vector<2x16x128xf32> to vector<32x128xf32>
    %11 = arith.truncf %10 : vector<32x128xf32> to vector<32x128xbf16>
    %c0_10 = arith.constant 0 : index
    %c2 = arith.constant 2 : index
    %c0_11 = arith.constant 0 : index
    %12 = vector.load %arg11[%c0_10, %c2, %c0_11] : memref<2x18x128xf32, #tpu.memory_space<vmem>>, vector<2x16x128xf32>
    %13 = vector.shape_cast %12 : vector<2x16x128xf32> to vector<32x128xf32>
    %14 = arith.truncf %13 : vector<32x128xf32> to vector<32x128xbf16>
    %15 = tpu.concatenate %8, %11, %14 in 1 : vector<32x128xbf16>, vector<32x128xbf16>, vector<32x128xbf16> -> vector<32x384xbf16>
    %c0_12 = arith.constant 0 : index
    %c0_13 = arith.constant 0 : index
    %c0_14 = arith.constant 0 : index
    %16 = vector.load %arg2[%c0_12, %c0_13, %c0_14] : memref<1x384x256xbf16, #tpu.memory_space<vmem>>, vector<1x384x256xbf16>
    %17 = vector.shape_cast %16 : vector<1x384x256xbf16> to vector<384x256xbf16>
    %cst = arith.constant dense<0.000000e+00> : vector<32x256xf32>
    %18 = tpu.matmul %15, %17, %cst {dimension_numbers = #tpu.dot_dimension_numbers<[1], [0], [0], [1], [0, 0, 1, 1], [], []>} : vector<32x384xbf16>, vector<384x256xbf16>, vector<32x256xf32> -> vector<32x256xf32>
    %19 = vector.extract_strided_slice %18 {offsets = [0, 0], sizes = [32, 128], strides = [1, 1]} : vector<32x256xf32> to vector<32x128xf32>
    %c0_15 = arith.constant 0 : index
    %c0_16 = arith.constant 0 : index
    %c0_17 = arith.constant 0 : index
    %20 = vector.load %arg4[%c0_15, %c0_16, %c0_17] : memref<1x1x128xf32, #tpu.memory_space<vmem>>, vector<1x1x128xf32>
    %21 = vector.shape_cast %20 : vector<1x1x128xf32> to vector<1x128xf32>
    %c0_18 = arith.constant 0 : index
    %c0_19 = arith.constant 0 : index
    %c0_20 = arith.constant 0 : index
    %22 = vector.load %arg5[%c0_18, %c0_19, %c0_20] : memref<1x1x128xf32, #tpu.memory_space<vmem>>, vector<1x1x128xf32>
    %23 = vector.shape_cast %22 : vector<1x1x128xf32> to vector<1x128xf32>
    %cst_21 = arith.constant dense<0.000000e+00> : vector<128xf32>
    %24 = vector.multi_reduction <add>, %19, %cst_21 [0] : vector<32x128xf32> to vector<128xf32>
    %25 = vector.shape_cast %24 : vector<128xf32> to vector<1x128xf32>
    %26 = arith.mulf %19, %19 : vector<32x128xf32>
    %cst_22 = arith.constant dense<0.000000e+00> : vector<128xf32>
    %27 = vector.multi_reduction <add>, %26, %cst_22 [0] : vector<32x128xf32> to vector<128xf32>
    %28 = vector.shape_cast %27 : vector<128xf32> to vector<1x128xf32>
    %29 = tpu.concatenate %25, %28 in 0 : vector<1x128xf32>, vector<1x128xf32> -> vector<2x128xf32>
    %c8_i32 = arith.constant 8 : i32
    %30 = tpu.dynamic_rotate %29 by %c8_i32 dim 1 : vector<2x128xf32>, i32 -> vector<2x128xf32>
    %31 = arith.addf %29, %30 : vector<2x128xf32>
    %c16_i32 = arith.constant 16 : i32
    %32 = tpu.dynamic_rotate %31 by %c16_i32 dim 1 : vector<2x128xf32>, i32 -> vector<2x128xf32>
    %33 = arith.addf %31, %32 : vector<2x128xf32>
    %c32_i32 = arith.constant 32 : i32
    %34 = tpu.dynamic_rotate %33 by %c32_i32 dim 1 : vector<2x128xf32>, i32 -> vector<2x128xf32>
    %35 = arith.addf %33, %34 : vector<2x128xf32>
    %c64_i32 = arith.constant 64 : i32
    %36 = tpu.dynamic_rotate %35 by %c64_i32 dim 1 : vector<2x128xf32>, i32 -> vector<2x128xf32>
    %37 = arith.addf %35, %36 : vector<2x128xf32>
    %38 = vector.extract_strided_slice %37 {offsets = [0, 0], sizes = [1, 128], strides = [1, 1]} : vector<2x128xf32> to vector<1x128xf32>
    %cst_23 = arith.constant 0.001953125 : f32
    %39 = vector.broadcast %cst_23 : f32 to vector<1x128xf32>
    %40 = arith.mulf %38, %39 : vector<1x128xf32>
    %41 = vector.extract_strided_slice %37 {offsets = [1, 0], sizes = [1, 128], strides = [1, 1]} : vector<2x128xf32> to vector<1x128xf32>
    %cst_24 = arith.constant 0.001953125 : f32
    %42 = vector.broadcast %cst_24 : f32 to vector<1x128xf32>
    %43 = arith.mulf %41, %42 : vector<1x128xf32>
    %44 = arith.mulf %40, %40 : vector<1x128xf32>
    %45 = arith.subf %43, %44 : vector<1x128xf32>
    %cst_25 = arith.constant 9.99999974E-6 : f32
    %46 = vector.broadcast %cst_25 : f32 to vector<1x128xf32>
    %47 = arith.addf %45, %46 : vector<1x128xf32>
    %48 = math.rsqrt %47 : vector<1x128xf32>
    %49 = arith.mulf %21, %48 : vector<1x128xf32>
    %50 = vector.broadcast %49 : vector<1x128xf32> to vector<32x128xf32>
    %51 = arith.mulf %19, %50 : vector<32x128xf32>
    %52 = arith.mulf %40, %49 : vector<1x128xf32>
    %53 = arith.subf %23, %52 : vector<1x128xf32>
    %54 = vector.broadcast %53 : vector<1x128xf32> to vector<32x128xf32>
    %55 = arith.addf %51, %54 : vector<32x128xf32>
    %cst_26 = arith.constant 0.000000e+00 : f32
    %56 = vector.broadcast %cst_26 : f32 to vector<32x128xf32>
    %57 = arith.maximumf %55, %56 : vector<32x128xf32>
    %58 = vector.shape_cast %57 : vector<32x128xf32> to vector<2x16x128xf32>
    %c0_27 = arith.constant 0 : index
    %c1_28 = arith.constant 1 : index
    %c0_29 = arith.constant 0 : index
    %59 = vector.load %arg11[%c0_27, %c1_28, %c0_29] : memref<2x18x128xf32, #tpu.memory_space<vmem>>, vector<2x16x128xf32>
    tpu.vector_store %arg11[%c0_27, %c1_28, %c0_29], %58 {strides = array<i32>} : memref<2x18x128xf32, #tpu.memory_space<vmem>>, vector<2x16x128xf32>,
    %c0_30 = arith.constant 0 : index
    %c0_31 = arith.constant 0 : index
    %c0_32 = arith.constant 0 : index
    %60 = vector.load %arg11[%c0_30, %c0_31, %c0_32] : memref<2x18x128xf32, #tpu.memory_space<vmem>>, vector<2x16x128xf32>
    %61 = vector.shape_cast %60 : vector<2x16x128xf32> to vector<32x128xf32>
    %62 = arith.truncf %61 : vector<32x128xf32> to vector<32x128xbf16>
    %c0_33 = arith.constant 0 : index
    %c1_34 = arith.constant 1 : index
    %c0_35 = arith.constant 0 : index
    %63 = vector.load %arg11[%c0_33, %c1_34, %c0_35] : memref<2x18x128xf32, #tpu.memory_space<vmem>>, vector<2x16x128xf32>
    %64 = vector.shape_cast %63 : vector<2x16x128xf32> to vector<32x128xf32>
    %65 = arith.truncf %64 : vector<32x128xf32> to vector<32x128xbf16>
    %c0_36 = arith.constant 0 : index
    %c2_37 = arith.constant 2 : index
    %c0_38 = arith.constant 0 : index
    %66 = vector.load %arg11[%c0_36, %c2_37, %c0_38] : memref<2x18x128xf32, #tpu.memory_space<vmem>>, vector<2x16x128xf32>
    %67 = vector.shape_cast %66 : vector<2x16x128xf32> to vector<32x128xf32>
    %68 = arith.truncf %67 : vector<32x128xf32> to vector<32x128xbf16>
    %69 = tpu.concatenate %62, %65, %68 in 1 : vector<32x128xbf16>, vector<32x128xbf16>, vector<32x128xbf16> -> vector<32x384xbf16>
    %c0_39 = arith.constant 0 : index
    %c0_40 = arith.constant 0 : index
    %c0_41 = arith.constant 0 : index
    %70 = vector.load %arg3[%c0_39, %c0_40, %c0_41] : memref<1x384x128xbf16, #tpu.memory_space<vmem>>, vector<1x384x128xbf16>
    %71 = vector.shape_cast %70 : vector<1x384x128xbf16> to vector<384x128xbf16>
    %cst_42 = arith.constant dense<0.000000e+00> : vector<32x128xf32>
    %72 = tpu.matmul %69, %71, %cst_42 {dimension_numbers = #tpu.dot_dimension_numbers<[1], [0], [0], [1], [0, 0, 1, 1], [], []>} : vector<32x384xbf16>, vector<384x128xbf16>, vector<32x128xf32> -> vector<32x128xf32>
    %c0_43 = arith.constant 0 : index
    %c0_44 = arith.constant 0 : index
    %c0_45 = arith.constant 0 : index
    %73 = vector.load %arg6[%c0_43, %c0_44, %c0_45] : memref<1x1x128xf32, #tpu.memory_space<vmem>>, vector<1x1x128xf32>
    %74 = vector.shape_cast %73 : vector<1x1x128xf32> to vector<1x128xf32>
    %c0_46 = arith.constant 0 : index
    %c0_47 = arith.constant 0 : index
    %c0_48 = arith.constant 0 : index
    %75 = vector.load %arg7[%c0_46, %c0_47, %c0_48] : memref<1x1x128xf32, #tpu.memory_space<vmem>>, vector<1x1x128xf32>
    %76 = vector.shape_cast %75 : vector<1x1x128xf32> to vector<1x128xf32>
    %cst_49 = arith.constant dense<0.000000e+00> : vector<128xf32>
    %77 = vector.multi_reduction <add>, %72, %cst_49 [0] : vector<32x128xf32> to vector<128xf32>
    %78 = vector.shape_cast %77 : vector<128xf32> to vector<1x128xf32>
    %79 = arith.mulf %72, %72 : vector<32x128xf32>
    %cst_50 = arith.constant dense<0.000000e+00> : vector<128xf32>
    %80 = vector.multi_reduction <add>, %79, %cst_50 [0] : vector<32x128xf32> to vector<128xf32>
    %81 = vector.shape_cast %80 : vector<128xf32> to vector<1x128xf32>
    %82 = tpu.concatenate %78, %81 in 0 : vector<1x128xf32>, vector<1x128xf32> -> vector<2x128xf32>
    %c8_i32_51 = arith.constant 8 : i32
    %83 = tpu.dynamic_rotate %82 by %c8_i32_51 dim 1 : vector<2x128xf32>, i32 -> vector<2x128xf32>
    %84 = arith.addf %82, %83 : vector<2x128xf32>
    %c16_i32_52 = arith.constant 16 : i32
    %85 = tpu.dynamic_rotate %84 by %c16_i32_52 dim 1 : vector<2x128xf32>, i32 -> vector<2x128xf32>
    %86 = arith.addf %84, %85 : vector<2x128xf32>
    %c32_i32_53 = arith.constant 32 : i32
    %87 = tpu.dynamic_rotate %86 by %c32_i32_53 dim 1 : vector<2x128xf32>, i32 -> vector<2x128xf32>
    %88 = arith.addf %86, %87 : vector<2x128xf32>
    %c64_i32_54 = arith.constant 64 : i32
    %89 = tpu.dynamic_rotate %88 by %c64_i32_54 dim 1 : vector<2x128xf32>, i32 -> vector<2x128xf32>
    %90 = arith.addf %88, %89 : vector<2x128xf32>
    %91 = vector.extract_strided_slice %90 {offsets = [0, 0], sizes = [1, 128], strides = [1, 1]} : vector<2x128xf32> to vector<1x128xf32>
    %cst_55 = arith.constant 0.001953125 : f32
    %92 = vector.broadcast %cst_55 : f32 to vector<1x128xf32>
    %93 = arith.mulf %91, %92 : vector<1x128xf32>
    %94 = vector.extract_strided_slice %90 {offsets = [1, 0], sizes = [1, 128], strides = [1, 1]} : vector<2x128xf32> to vector<1x128xf32>
    %cst_56 = arith.constant 0.001953125 : f32
    %95 = vector.broadcast %cst_56 : f32 to vector<1x128xf32>
    %96 = arith.mulf %94, %95 : vector<1x128xf32>
    %97 = arith.mulf %93, %93 : vector<1x128xf32>
    %98 = arith.subf %96, %97 : vector<1x128xf32>
    %cst_57 = arith.constant 9.99999974E-6 : f32
    %99 = vector.broadcast %cst_57 : f32 to vector<1x128xf32>
    %100 = arith.addf %98, %99 : vector<1x128xf32>
    %101 = math.rsqrt %100 : vector<1x128xf32>
    %102 = arith.mulf %74, %101 : vector<1x128xf32>
    %103 = vector.broadcast %102 : vector<1x128xf32> to vector<32x128xf32>
    %104 = arith.mulf %72, %103 : vector<32x128xf32>
    %105 = arith.mulf %93, %102 : vector<1x128xf32>
    %106 = arith.subf %76, %105 : vector<1x128xf32>
    %107 = vector.broadcast %106 : vector<1x128xf32> to vector<32x128xf32>
    %108 = arith.addf %104, %107 : vector<32x128xf32>
    %109 = vector.extract_strided_slice %18 {offsets = [0, 128], sizes = [32, 128], strides = [1, 1]} : vector<32x256xf32> to vector<32x128xf32>
    %c0_58 = arith.constant 0 : index
    %c0_59 = arith.constant 0 : index
    %110 = vector.load %arg8[%c0_58, %c0_59] : memref<1x128xf32, #tpu.memory_space<vmem>>, vector<1x128xf32>
    %c0_60 = arith.constant 0 : index
    %c0_61 = arith.constant 0 : index
    %111 = vector.load %arg9[%c0_60, %c0_61] : memref<1x128xf32, #tpu.memory_space<vmem>>, vector<1x128xf32>
    %cst_62 = arith.constant dense<0.000000e+00> : vector<128xf32>
    %112 = vector.multi_reduction <add>, %109, %cst_62 [0] : vector<32x128xf32> to vector<128xf32>
    %113 = vector.shape_cast %112 : vector<128xf32> to vector<1x128xf32>
    %114 = arith.mulf %109, %109 : vector<32x128xf32>
    %cst_63 = arith.constant dense<0.000000e+00> : vector<128xf32>
    %115 = vector.multi_reduction <add>, %114, %cst_63 [0] : vector<32x128xf32> to vector<128xf32>
    %116 = vector.shape_cast %115 : vector<128xf32> to vector<1x128xf32>
    %117 = tpu.concatenate %113, %116 in 0 : vector<1x128xf32>, vector<1x128xf32> -> vector<2x128xf32>
    %c8_i32_64 = arith.constant 8 : i32
    %118 = tpu.dynamic_rotate %117 by %c8_i32_64 dim 1 : vector<2x128xf32>, i32 -> vector<2x128xf32>
    %119 = arith.addf %117, %118 : vector<2x128xf32>
    %c16_i32_65 = arith.constant 16 : i32
    %120 = tpu.dynamic_rotate %119 by %c16_i32_65 dim 1 : vector<2x128xf32>, i32 -> vector<2x128xf32>
    %121 = arith.addf %119, %120 : vector<2x128xf32>
    %c32_i32_66 = arith.constant 32 : i32
    %122 = tpu.dynamic_rotate %121 by %c32_i32_66 dim 1 : vector<2x128xf32>, i32 -> vector<2x128xf32>
    %123 = arith.addf %121, %122 : vector<2x128xf32>
    %c64_i32_67 = arith.constant 64 : i32
    %124 = tpu.dynamic_rotate %123 by %c64_i32_67 dim 1 : vector<2x128xf32>, i32 -> vector<2x128xf32>
    %125 = arith.addf %123, %124 : vector<2x128xf32>
    %126 = vector.extract_strided_slice %125 {offsets = [0, 0], sizes = [1, 128], strides = [1, 1]} : vector<2x128xf32> to vector<1x128xf32>
    %cst_68 = arith.constant 0.001953125 : f32
    %127 = vector.broadcast %cst_68 : f32 to vector<1x128xf32>
    %128 = arith.mulf %126, %127 : vector<1x128xf32>
    %129 = vector.extract_strided_slice %125 {offsets = [1, 0], sizes = [1, 128], strides = [1, 1]} : vector<2x128xf32> to vector<1x128xf32>
    %cst_69 = arith.constant 0.001953125 : f32
    %130 = vector.broadcast %cst_69 : f32 to vector<1x128xf32>
    %131 = arith.mulf %129, %130 : vector<1x128xf32>
    %132 = arith.mulf %128, %128 : vector<1x128xf32>
    %133 = arith.subf %131, %132 : vector<1x128xf32>
    %cst_70 = arith.constant 9.99999974E-6 : f32
    %134 = vector.broadcast %cst_70 : f32 to vector<1x128xf32>
    %135 = arith.addf %133, %134 : vector<1x128xf32>
    %136 = math.rsqrt %135 : vector<1x128xf32>
    %137 = arith.mulf %110, %136 : vector<1x128xf32>
    %138 = vector.broadcast %137 : vector<1x128xf32> to vector<32x128xf32>
    %139 = arith.mulf %109, %138 : vector<32x128xf32>
    %140 = arith.mulf %128, %137 : vector<1x128xf32>
    %141 = arith.subf %111, %140 : vector<1x128xf32>
    %142 = vector.broadcast %141 : vector<1x128xf32> to vector<32x128xf32>
    %143 = arith.addf %139, %142 : vector<32x128xf32>
    %c0_i32_71 = arith.constant 0 : i32
    %144 = arith.cmpi eq, %arg0, %c0_i32_71 : i32
    %145 = arith.extui %144 : i1 to i32
    %146 = arith.sitofp %145 : i32 to f32
    %147 = vector.broadcast %146 : f32 to vector<32x128xf32>
    %148 = arith.mulf %147, %143 : vector<32x128xf32>
    %cst_72 = arith.constant 1.000000e+00 : f32
    %149 = arith.subf %cst_72, %146 : f32
    %150 = vector.broadcast %149 : f32 to vector<32x128xf32>
    %151 = arith.mulf %150, %3 : vector<32x128xf32>
    %152 = arith.addf %148, %151 : vector<32x128xf32>
    %153 = arith.addf %108, %152 : vector<32x128xf32>
    %cst_73 = arith.constant 0.000000e+00 : f32
    %154 = vector.broadcast %cst_73 : f32 to vector<32x128xf32>
    %155 = arith.maximumf %153, %154 : vector<32x128xf32>
    %c0_74 = arith.constant 0 : index
    %c0_75 = arith.constant 0 : index
    %156 = vector.load %arg12[%c0_74, %c0_75] : memref<32x128xf32, #tpu.memory_space<vmem>>, vector<32x128xf32>
    tpu.vector_store %arg12[%c0_74, %c0_75], %155 {strides = array<i32>} : memref<32x128xf32, #tpu.memory_space<vmem>>, vector<32x128xf32>,
    %c0_76 = arith.constant 0 : index
    %c0_77 = arith.constant 0 : index
    %157 = vector.load %arg10[%c0_76, %c0_77] : memref<32x128xf32, #tpu.memory_space<vmem>>, vector<32x128xf32>
    tpu.vector_store %arg10[%c0_76, %c0_77], %155 {strides = array<i32>} : memref<32x128xf32, #tpu.memory_space<vmem>>, vector<32x128xf32>,
    return
  }
  func.func @transform_0(%arg0: i32) -> (i32, i32) {
    %c0_i32 = arith.constant 0 : i32
    %c0_i32_0 = arith.constant 0 : i32
    %c0_i32_1 = arith.constant 0 : i32
    return %c0_i32, %c0_i32_0 : i32, i32
  }
  func.func @transform_1(%arg0: i32) -> (i32, i32, i32) {
    %c0_i32 = arith.constant 0 : i32
    %c0_i32_0 = arith.constant 0 : i32
    %c0_i32_1 = arith.constant 0 : i32
    return %arg0, %c0_i32, %c0_i32_0 : i32, i32, i32
  }
  func.func @transform_2(%arg0: i32) -> (i32, i32, i32) {
    %c0_i32 = arith.constant 0 : i32
    %c0_i32_0 = arith.constant 0 : i32
    %c0_i32_1 = arith.constant 0 : i32
    return %arg0, %c0_i32, %c0_i32_0 : i32, i32, i32
  }
  func.func @transform_3(%arg0: i32) -> (i32, i32, i32) {
    %c0_i32 = arith.constant 0 : i32
    %c0_i32_0 = arith.constant 0 : i32
    %c0_i32_1 = arith.constant 0 : i32
    return %arg0, %c0_i32, %c0_i32_0 : i32, i32, i32
  }
  func.func @transform_4(%arg0: i32) -> (i32, i32, i32) {
    %c0_i32 = arith.constant 0 : i32
    %c0_i32_0 = arith.constant 0 : i32
    %c0_i32_1 = arith.constant 0 : i32
    return %arg0, %c0_i32, %c0_i32_0 : i32, i32, i32
  }
  func.func @transform_5(%arg0: i32) -> (i32, i32, i32) {
    %c0_i32 = arith.constant 0 : i32
    %c0_i32_0 = arith.constant 0 : i32
    %c0_i32_1 = arith.constant 0 : i32
    return %arg0, %c0_i32, %c0_i32_0 : i32, i32, i32
  }
  func.func @transform_6(%arg0: i32) -> (i32, i32, i32) {
    %c0_i32 = arith.constant 0 : i32
    %c0_i32_0 = arith.constant 0 : i32
    %c0_i32_1 = arith.constant 0 : i32
    return %arg0, %c0_i32, %c0_i32_0 : i32, i32, i32
  }
  func.func @transform_7(%arg0: i32) -> (i32, i32) {
    %c0_i32 = arith.constant 0 : i32
    %c0_i32_0 = arith.constant 0 : i32
    %c0_i32_1 = arith.constant 0 : i32
    return %c0_i32, %c0_i32_0 : i32, i32
  }
  func.func @transform_8(%arg0: i32) -> (i32, i32) {
    %c0_i32 = arith.constant 0 : i32
    %c0_i32_0 = arith.constant 0 : i32
    %c0_i32_1 = arith.constant 0 : i32
    return %c0_i32, %c0_i32_0 : i32, i32
  }
  func.func @transform_9(%arg0: i32) -> (i32, i32) {
    %c0_i32 = arith.constant 0 : i32
    %c0_i32_0 = arith.constant 0 : i32
    %c0_i32_1 = arith.constant 0 : i32
    return %c0_i32, %c0_i32_0 : i32, i32
  }
}

</mosaic_0001>

<bundles_post_ra>
// kernel: chain_apply.1
= control target key start
LH: loop header
LB: loop body
LE: loop exit
PB: predicated region body
PF: predicated region fallthrough
CT: control target
= control target key end

     0   :  { %s1998_s30 = smov 0   ;;  %s2362_s0 = inlined_call_operand.vmem [shape: f32[32,128], index: 0, kind: input, shape index: {}]   ;;  %s2363_s1 = inlined_call_operand.vmem [shape: bf16[2,384,256], index: 1, kind: input, shape index: {}]   ;;  %s2364_s2 = inlined_call_operand.vmem [shape: bf16[2,384,128], index: 2, kind: input, shape index: {}]   ;;  %s2365_s3 = inlined_call_operand.vmem [shape: f32[2,1,128], index: 3, kind: input, shape index: {}]   ;;  %s2366_s4 = inlined_call_operand.vmem [shape: f32[2,1,128], index: 4, kind: input, shape index: {}]   ;;  %s2367_s5 = inlined_call_operand.vmem [shape: f32[2,1,128], index: 5, kind: input, shape index: {}]   ;;  %s2368_s6 = inlined_call_operand.vmem [shape: f32[2,1,128], index: 6, kind: input, shape index: {}]   ;;  %s2369_s7 = inlined_call_operand.vmem [shape: f32[1,128], index: 7, kind: input, shape index: {}]   ;;  %s2370_s8 = inlined_call_operand.vmem [shape: f32[1,128], index: 8, kind: input, shape index: {}]   ;;  %s2371_s9 = inlined_call_operand.vmem [shape: f32[32,128], index: 9, kind: output, shape index: {}]  }
   0x1 LB: > { %s2004_s10 = sadd.s32 4294967295, %s1941_s30   ;;  %p1540_p0 = scmp.ge.s32.totalorder %s1941_s30, 1  ;;  %s1941_s30 = sphi %s1998_s30, %s19_s30  }
   0x2   : > { %p324_p1 = scmp.lt.s32.totalorder %s1941_s30, 3 }
   0x4   : > { %p325_p2 = pnand %p1540_p0, %p324_p1 }
   0x5   : > { %p372_p3 = scmp.lt.s32.totalorder (!%p325_p2), %s2004_s10, 1  ;;  %p394_p4 = scmp.eq.s32.totalorder (!%p325_p2), %s2004_s10, 0 }
   0x6   : > { %328 = sbr.rel (%p325_p2) target bundleno = 1437 (0x59d), region = 56  ;;  %p1543_p5 = scmp.ne.s32.totalorder (!%p325_p2), %s2004_s10, 0 }
   0xb   : > { %s2011_s11 = scalar_select %p372_p3, %s2004_s10, 1 }
   0xc   : > { %397 = sbr.rel (%p1543_p5) target bundleno = 28 (0x1c), region = 60 }
   0xd   : > { %s1914_s12 = smul.u32 384, %s2011_s11  ;;  %s384_s15 = scalar_lea.vmem %s2365_s3, %s2011_s11 }
   0xe   : > { %s1915_s16 = smul.u32 192, %s2011_s11  ;;  %s387_s19 = scalar_lea.vmem %s2366_s4, %s2011_s11 }
   0xf   : > { %s2026_s22 = scalar_lea.vmem %s2363_s1, %s1914_s12  ;;  %s390_s25 = scalar_lea.vmem %s2367_s5, %s2011_s11 }
  0x10   : > { %s2035_s28 = scalar_lea.vmem %s2364_s2, %s1915_s16  ;;  %s393_s14 = scalar_lea.vmem %s2368_s6, %s2011_s11 }
  0x11   : > { %v1943_v0 = vmov 0.0   ;;  %v404_v1 = vld [vmem:[%s2362_s0] sm:$0xff]  ;;  %v405_v2 = vld [vmem:[%s2362_s0 + $0x8] sm:$0xff]  ;;  %v406_v3 = vld [vmem:[%s2362_s0 + $0x10] sm:$0xff] }
  0x12   : > { %398 = vst [vmem:[#allocation2] sm:$0xff] %v1943_v0  ;;  %v407_v4 = vld [vmem:[%s2362_s0 + $0x18] sm:$0xff] }
  0x13   : > { %399 = vst [vmem:[#allocation2 + $0x8] sm:$0xff] %v1943_v0 }
  0x14   : > { %400 = vst [vmem:[#allocation2 + $0x10] sm:$0x3] %v1943_v0 }
  0x15   : > { %401 = vst [vmem:[#allocation2 + $0x18] sm:$0xff] %v1943_v0 }
  0x16   : > { %402 = vst [vmem:[#allocation2 + $0x20] sm:$0xff] %v1943_v0 }
  0x17   : > { %403 = vst [vmem:[#allocation2 + $0x28] sm:$0x3] %v1943_v0 }
  0x18   : > { %408 = vst [vmem:[#allocation3 + $0x10] sm:$0xff] %v404_v1 }
  0x19   : > { %409 = vst [vmem:[#allocation3] sm:$0xff] %v405_v2 }
  0x1a   : > { %410 = vst [vmem:[#allocation3 + $0x18] sm:$0xff] %v406_v3 }
  0x1b   : > { %411 = vst [vmem:[#allocation3 + $0x8] sm:$0xff] %v407_v4 }
  0x1c PF: > { %v1602_v5 = vld [vmem:[%s2026_s22 + $0x70] sm:$0xf]  ;;  %v1849_v6 = vld [vmem:[%s2026_s22 + $0x74] sm:$0xf0]  ;;  %v1594_v14 = vld [vmem:[%s2026_s22 + $0x60] sm:$0xf] }
  0x1d   : > { %v1666_v7 = vld [vmem:[%s2026_s22 + $0xf0] sm:$0xf]  ;;  %v1603_v8 = vor.u32 %v1849_v6, %v1602_v5  ;;  %v1865_v9 = vld [vmem:[%s2026_s22 + $0xf4] sm:$0xf0]  ;;  %v1847_v15 = vld [vmem:[%s2026_s22 + $0x64] sm:$0xf0] }
  0x1e   : > { %v1730_v10 = vld [vmem:[%s2026_s22 + $0x170] sm:$0xf]  ;;  %v1881_v11 = vld [vmem:[%s2026_s22 + $0x174] sm:$0xf0]  ;;  %v1667_v12 = vor.u32 %v1865_v9, %v1666_v7  ;;  %v1658_v16 = vld [vmem:[%s2026_s22 + $0xe0] sm:$0xf]  ;;  %v1595_v17 = vor.u32 %v1847_v15, %v1594_v14 }
  0x1f   : > { %v1731_v13 = vor.u32 %v1881_v11, %v1730_v10  ;;  %768 = vmatpush.bf16.msra.mxu0 %v1603_v8  ;;  %v1863_v18 = vld [vmem:[%s2026_s22 + $0xe4] sm:$0xf0]  ;;  %v1722_v19 = vld [vmem:[%s2026_s22 + $0x160] sm:$0xf]  ;;  %v1586_v23 = vld [vmem:[%s2026_s22 + $0x50] sm:$0xf] }
  0x20   : > { %v1879_v20 = vld [vmem:[%s2026_s22 + $0x164] sm:$0xf0]  ;;  %787 = vmatpush.bf16.msra.mxu1 %v1667_v12  ;;  %v1659_v21 = vor.u32 %v1863_v18, %v1658_v16  ;;  %v1845_v24 = vld [vmem:[%s2026_s22 + $0x54] sm:$0xf0]  ;;  %v1650_v25 = vld [vmem:[%s2026_s22 + $0xd0] sm:$0xf] }
  0x21   : > { %806 = vmatpush.bf16.msra.mxu2 %v1731_v13  ;;  %v1723_v22 = vor.u32 %v1879_v20, %v1722_v19  ;;  %v1861_v26 = vld [vmem:[%s2026_s22 + $0xd4] sm:$0xf0]  ;;  %v1714_v27 = vld [vmem:[%s2026_s22 + $0x150] sm:$0xf]  ;;  %v1587_v29 = vor.u32 %v1845_v24, %v1586_v23  ;;  %v1578_v32 = vld [vmem:[%s2026_s22 + $0x40] sm:$0xf] }
  0x22   : > { %v1877_v28 = vld [vmem:[%s2026_s22 + $0x154] sm:$0xf0]  ;;  %v1651_v30 = vor.u32 %v1861_v26, %v1650_v25  ;;  %v1843_v33 = vld [vmem:[%s2026_s22 + $0x44] sm:$0xf0]  ;;  %v1642_v34 = vld [vmem:[%s2026_s22 + $0xc0] sm:$0xf] }
  0x23   : > { %769 = vmatpush.bf16.msra.mxu0 %v1595_v17  ;;  %v1715_v31 = vor.u32 %v1877_v28, %v1714_v27  ;;  %v1859_v35 = vld [vmem:[%s2026_s22 + $0xc4] sm:$0xf0]  ;;  %v1706_v36 = vld [vmem:[%s2026_s22 + $0x140] sm:$0xf]  ;;  %v1579_v38 = vor.u32 %v1843_v33, %v1578_v32  ;;  %v1570_v41 = vld [vmem:[%s2026_s22 + $0x30] sm:$0xf] }
  0x24   : > { %788 = vmatpush.bf16.msra.mxu1 %v1659_v21  ;;  %v1875_v37 = vld [vmem:[%s2026_s22 + $0x144] sm:$0xf0]  ;;  %v1643_v39 = vor.u32 %v1859_v35, %v1642_v34  ;;  %v1841_v42 = vld [vmem:[%s2026_s22 + $0x34] sm:$0xf0]  ;;  %v1634_v43 = vld [vmem:[%s2026_s22 + $0xb0] sm:$0xf] }
  0x25   : > { %807 = vmatpush.bf16.msra.mxu2 %v1723_v22  ;;  %v1707_v40 = vor.u32 %v1875_v37, %v1706_v36  ;;  %v1857_v44 = vld [vmem:[%s2026_s22 + $0xb4] sm:$0xf0]  ;;  %v1698_v45 = vld [vmem:[%s2026_s22 + $0x130] sm:$0xf]  ;;  %v1562_v47 = vld [vmem:[%s2026_s22 + $0x20] sm:$0xf]  ;;  %v1571_v48 = vor.u32 %v1841_v42, %v1570_v41 }
  0x26   : > { %v1873_v46 = vld [vmem:[%s2026_s22 + $0x134] sm:$0xf0]  ;;  %v1839_v49 = vld [vmem:[%s2026_s22 + $0x24] sm:$0xf0]  ;;  %v1626_v50 = vld [vmem:[%s2026_s22 + $0xa0] sm:$0xf]  ;;  %v1635_v52 = vor.u32 %v1857_v44, %v1634_v43 }
  0x27   : > { %770 = vmatpush.bf16.msra.mxu0 %v1587_v29  ;;  %v1855_v51 = vld [vmem:[%s2026_s22 + $0xa4] sm:$0xf0]  ;;  %v1699_v53 = vor.u32 %v1873_v46, %v1698_v45  ;;  %v2090_v55 = vld [vmem:[#allocation3] sm:$0xff]  ;;  %v2092_v56 = vld [vmem:[#allocation3 + $0x18] sm:$0xff]  ;;  %v1563_v60 = vor.u32 %v1839_v49, %v1562_v47  ;;  %vm906_vm0 = vcmask 1040384   ;;  %s1944_s26 = smov 8  }
  0x28   : > { %789 = vmatpush.bf16.msra.mxu1 %v1651_v30  ;;  %v2088_v54 = vld [vmem:[#allocation3 + $0x10] sm:$0xff]  ;;  %v1690_v57 = vld [vmem:[%s2026_s22 + $0x120] sm:$0xf]  ;;  %417 = vst [vmem:[#allocation2 + $0x9] sm:$0xff] %v2090_v55  ;;  %v1554_v61 = vld [vmem:[%s2026_s22 + $0x10] sm:$0xf]  ;;  %v1627_v62 = vor.u32 %v1855_v51, %v1626_v50  ;;  %v433_v11 = vpack.c.bf16 %v2090_v55, %v2090_v55  ;;  %v434_v42 = vpack.c.bf16 %v2092_v56, %v2092_v56 }
  0x29   : > { %808 = vmatpush.bf16.msra.mxu2 %v1715_v31  ;;  %v1871_v58 = vld [vmem:[%s2026_s22 + $0x124] sm:$0xf0]  ;;  %416 = vst [vmem:[#allocation2 + $0x1] sm:$0xff] %v2088_v54  ;;  %v2097_v59 = vld [vmem:[#allocation3 + $0x8] sm:$0xff]  ;;  %v1837_v0 = vld [vmem:[%s2026_s22 + $0x14] sm:$0xf0]  ;;  %v432_v10 = vpack.c.bf16 %v2088_v54, %v2088_v54 }
  0x2a   : > { %418 = vst [vmem:[#allocation2 + $0x19] sm:$0xff] %v2092_v56  ;;  %v1691_v63 = vor.u32 %v1871_v58, %v1690_v57  ;;  %v1618_v1 = vld [vmem:[%s2026_s22 + $0x90] sm:$0xf]  ;;  %v1853_v2 = vld [vmem:[%s2026_s22 + $0x94] sm:$0xf0]  ;;  %v1555_v6 = vor.u32 %v1837_v0, %v1554_v61  ;;  %v461_v28 = vunpack.c.l.b16 %v433_v11  ;;  %v435_v43 = vpack.c.bf16 %v2097_v59, %v2097_v59  ;;  %s1945_s27 = smov 16  }
  0x2b   : > { %771 = vmatpush.bf16.msra.mxu0 %v1579_v38  ;;  %419 = vst [vmem:[#allocation2 + $0x21] sm:$0xff] %v2097_v59  ;;  %v1682_v3 = vld [vmem:[%s2026_s22 + $0x110] sm:$0xf]  ;;  %v1869_v4 = vld [vmem:[%s2026_s22 + $0x114] sm:$0xf0]  ;;  %v1619_v12 = vor.u32 %v1853_v2, %v1618_v1  ;;  %v460_v27 = vunpack.c.l.b16 %v432_v10  ;;  %s1946_s29 = smov 32  }
  0x2c   : > { %790 = vmatpush.bf16.msra.mxu1 %v1643_v39  ;;  %v1546_v5 = vld [vmem:[%s2026_s22] sm:$0xf]  ;;  %v1835_v7 = vld [vmem:[%s2026_s22 + $0x4] sm:$0xf0]  ;;  %v1683_v13 = vor.u32 %v1869_v4, %v1682_v3  ;;  %v463_v49 = vunpack.c.l.b16 %v435_v43  ;;  %s1947_s13 = smov 64  }
  0x2d   : > { %809 = vmatpush.bf16.msra.mxu2 %v1707_v40  ;;  %v1610_v8 = vld [vmem:[%s2026_s22 + $0x80] sm:$0xf]  ;;  %v1851_v9 = vld [vmem:[%s2026_s22 + $0x84] sm:$0xf0]  ;;  %v1547_v21 = vor.u32 %v1835_v7, %v1546_v5  ;;  %v2120_v34 = vpack.c.b16 %v461_v28, %v460_v27 }
  0x2e   : > { %v1674_v14 = vld [vmem:[%s2026_s22 + $0x100] sm:$0xf]  ;;  %v1867_v15 = vld [vmem:[%s2026_s22 + $0x104] sm:$0xf0]  ;;  %v1611_v25 = vor.u32 %v1851_v9, %v1610_v8 }
  0x2f   : > { %772 = vmatpush.bf16.msra.mxu0 %v1571_v48  ;;  %v437_v20 = vld [vmem:[#allocation2 + $0xa] sm:$0xff]  ;;  %v1675_v29 = vor.u32 %v1867_v15, %v1674_v14  ;;  %v462_v48 = vunpack.c.l.b16 %v434_v42 }
  0x30   : > { %791 = vmatpush.bf16.msra.mxu1 %v1635_v52  ;;  %v420_v16 = vld [vmem:[#allocation2] sm:$0xff]  ;;  %v421_v17 = vld [vmem:[#allocation2 + $0x8] sm:$0xff]  ;;  %v441_v24 = vpack.c.bf16 %v437_v20, %v437_v20 }
  0x31   : > { %810 = vmatpush.bf16.msra.mxu2 %v1699_v53  ;;  %v424_v18 = vpack.c.bf16 %v420_v16, %v420_v16  ;;  %v436_v19 = vld [vmem:[#allocation2 + $0x2] sm:$0xff]  ;;  %v425_v22 = vpack.c.bf16 %v421_v17, %v421_v17  ;;  %v422_v36 = vld [vmem:[#allocation2 + $0x18] sm:$0xff]  ;;  %v2133_v53 = vpack.c.b16 %v463_v49, %v462_v48 }
  0x32   : > { %v440_v23 = vpack.c.bf16 %v436_v19, %v436_v19  ;;  %v473_v32 = vunpack.c.l.b16 %v441_v24  ;;  %v423_v37 = vld [vmem:[#allocation2 + $0x20] sm:$0xff]  ;;  %v426_v40 = vpack.c.bf16 %v422_v36, %v422_v36 }
  0x33   : > { %773 = vmatpush.bf16.msra.mxu0 %v1563_v60  ;;  %v448_v26 = vunpack.c.l.b16 %v424_v18  ;;  %v449_v30 = vunpack.c.l.b16 %v425_v22  ;;  %v438_v38 = vld [vmem:[#allocation2 + $0x1a] sm:$0xff]  ;;  %v439_v39 = vld [vmem:[#allocation2 + $0x22] sm:$0xff]  ;;  %v427_v41 = vpack.c.bf16 %v423_v37, %v423_v37 }
  0x34   : > { %792 = vmatpush.bf16.msra.mxu1 %v1627_v62  ;;  %v472_v31 = vunpack.c.l.b16 %v440_v23  ;;  %v442_v44 = vpack.c.bf16 %v438_v38, %v438_v38  ;;  %v443_v45 = vpack.c.bf16 %v439_v39, %v439_v39  ;;  %v450_v46 = vunpack.c.l.b16 %v426_v40  ;;  %v1596_v49 = vld [vmem:[%s2026_s22 + $0x68] sm:$0xf0] }
  0x35   : > { %811 = vmatpush.bf16.msra.mxu2 %v1691_v63  ;;  %v2118_v33 = vpack.c.b16 %v449_v30, %v448_v26  ;;  %v451_v47 = vunpack.c.l.b16 %v427_v41 }
  0x36   : > { %v2122_v35 = vpack.c.b16 %v473_v32, %v472_v31  ;;  %v474_v50 = vunpack.c.l.b16 %v442_v44  ;;  %v475_v51 = vunpack.c.l.b16 %v443_v45  ;;  %v1848_v45 = vld [vmem:[%s2026_s22 + $0x74] sm:$0xf] }
  0x37   : > { %774 = vmatpush.bf16.msra.mxu0 %v1555_v6  ;;  %v2131_v52 = vpack.c.b16 %v451_v47, %v450_v46  ;;  %v1604_v46 = vld [vmem:[%s2026_s22 + $0x78] sm:$0xf0]  ;;  %v1846_v47 = vld [vmem:[%s2026_s22 + $0x64] sm:$0xf] }
  0x38   : > { %793 = vmatpush.bf16.msra.mxu1 %v1619_v12  ;;  %v2135_v57 = vpack.c.b16 %v475_v51, %v474_v50  ;;  %v1607_v48 = vor.u32 %v1848_v45, %v1604_v46  ;;  %v1864_v50 = vld [vmem:[%s2026_s22 + $0xf4] sm:$0xf]  ;;  %v1668_v51 = vld [vmem:[%s2026_s22 + $0xf8] sm:$0xf0] }
  0x39   : > { %812 = vmatpush.bf16.msra.mxu2 %v1683_v13  ;;  %v1836_v46 = vld [vmem:[%s2026_s22 + $0x14] sm:$0xf] }
  0x3a   : > { %825 = vmatpush.bf16.msra.mxu3 %v1607_v48 }
  0x3b   : > { %775 = vmatpush.bf16.msra.mxu0 %v1547_v21 }
  0x3c   : > { %794 = vmatpush.bf16.msra.mxu1 %v1611_v25 }
  0x3d   : > { %813 = vmatpush.bf16.msra.mxu2 %v1675_v29 }
  0x3e   : > { %776 = vmatmul.bf16.vlgmr.msra.gmra.mxu0 %v2118_v33 }
  0x3f   : > { %795 = vmatmul.bf16.vlgmr.msra.gmra.mxu1 %v2120_v34 }
  0x40   : > { %814 = vmatmul.bf16.vlgmr.msra.gmra.mxu2 %v2122_v35 }
  0x4e   : > { %781 = vmatmul.bf16.gmra.mxu0 %v2131_v52 }
  0x4f   : > { %800 = vmatmul.bf16.gmra.mxu1 %v2133_v53 }
  0x50   : > { %819 = vmatmul.bf16.gmra.mxu2 %v2135_v57 }
  0xbb   : > { %v777_v58 = vpop.f32.mrf.mxu0 }
  0xbc   : > { %v796_v60 = vpop.f32.mrf.mxu1 }
  0xbd   : > { %v797_v3 = vadd.f32 %v796_v60, %v777_v58  ;;  %v1671_v58 = vor.u32 %v1864_v50, %v1668_v51  ;;  %v1880_v60 = vld [vmem:[%s2026_s22 + $0x174] sm:$0xf] }
  0xbf   : > { %844 = vmatpush.bf16.msrb.mxu0 %v1671_v58  ;;  %v1834_v58 = vld [vmem:[%s2026_s22 + $0x4] sm:$0xf] }
  0xc3   : > { %v815_v61 = vpop.f32.mrf.mxu2  ;;  %v779_v62 = vpop.f32.mrf.mxu0 }
  0xc4   : > { %v798_v63 = vpop.f32.mrf.mxu1  ;;  %v2142_v8 = vadd.f32 %v815_v61, %v797_v3  ;;  %v1599_v61 = vor.u32 %v1846_v47, %v1596_v49  ;;  %v1556_v47 = vld [vmem:[%s2026_s22 + $0x18] sm:$0xf0] }
  0xc5   : > { %v799_v4 = vadd.f32 %v798_v63, %v779_v62  ;;  %v1732_v62 = vld [vmem:[%s2026_s22 + $0x178] sm:$0xf0]  ;;  %v1862_v63 = vld [vmem:[%s2026_s22 + $0xe4] sm:$0xf]  ;;  %v1559_v49 = vor.u32 %v1836_v46, %v1556_v47  ;;  %v1883_v46 = vld [vmem:[%s2035_s28 + $0x8] sm:$0xff] }
  0xc6   : > { %v893_v13 = vmul.f32 %v2142_v8, %v2142_v8  ;;  %v1735_v3 = vor.u32 %v1880_v60, %v1732_v62  ;;  %826 = vmatpush.bf16.msra.mxu3 %v1599_v61  ;;  %v1548_v60 = vld [vmem:[%s2026_s22 + $0x8] sm:$0xf0]  ;;  %v1870_v61 = vld [vmem:[%s2026_s22 + $0x124] sm:$0xf] }
  0xc7   : > { %v1551_v62 = vor.u32 %v1834_v58, %v1548_v60  ;;  %v1899_v47 = vld [vmem:[%s2035_s28 + $0x88] sm:$0xff]  ;;  %v882_v58 = vld [vmem:[%s384_s15] sm:$0x1]  ;;  %s1428_s15 = scalar_select %p394_p4, 1, 0 }
  0xc8   : > { %863 = vmatpush.bf16.msrb.mxu1 %v1735_v3 }
  0xc9   : > { %s1429_s16 = scvt.s32.f32 %s1428_s15 }
  0xcb   : > { %v817_v0 = vpop.f32.mrf.mxu2  ;;  %v782_v1 = vpop.f32.mrf.mxu0  ;;  %s1435_s23 = ssub.f32 1.0, %s1429_s16 }
  0xcc   : > { %v801_v2 = vpop.f32.mrf.mxu1  ;;  %v2140_v7 = vadd.f32 %v817_v0, %v799_v4  ;;  %v1660_v0 = vld [vmem:[%s2026_s22 + $0xe8] sm:$0xf0] }
  0xcd   : > { %v802_v5 = vadd.f32 %v801_v2, %v782_v1  ;;  %v1844_v1 = vld [vmem:[%s2026_s22 + $0x54] sm:$0xf]  ;;  %v1588_v2 = vld [vmem:[%s2026_s22 + $0x58] sm:$0xf0]  ;;  %v1663_v4 = vor.u32 %v1862_v63, %v1660_v0  ;;  %v1692_v63 = vld [vmem:[%s2026_s22 + $0x128] sm:$0xf0] }
  0xce   : > { %v894_v12 = vmul.f32 %v2140_v7, %v2140_v7  ;;  %v884_v14 = vadd.f32 %v2140_v7, %v2142_v8  ;;  %v1695_v0 = vor.u32 %v1870_v61, %v1692_v63 }
  0xcf   : > { %845 = vmatpush.bf16.msrb.mxu0 %v1663_v4  ;;  %v1868_v4 = vld [vmem:[%s2026_s22 + $0x114] sm:$0xf] }
  0xd0   : > { %v897_v18 = vadd.f32 %v894_v12, %v893_v13  ;;  %v1591_v13 = vor.u32 %v1844_v1, %v1588_v2  ;;  %v1852_v1 = vld [vmem:[%s2026_s22 + $0x94] sm:$0xf]  ;;  %v1620_v2 = vld [vmem:[%s2026_s22 + $0x98] sm:$0xf0] }
  0xd1   : > { %v1623_v3 = vor.u32 %v1852_v1, %v1620_v2 }
  0xd2   : > { %827 = vmatpush.bf16.msra.mxu3 %v1591_v13  ;;  %v1676_v13 = vld [vmem:[%s2026_s22 + $0x108] sm:$0xf0] }
  0xd3   : > { %v820_v6 = vpop.f32.mrf.mxu2  ;;  %v784_v10 = vpop.f32.mrf.mxu0 }
  0xd4   : > { %v2144_v9 = vadd.f32 %v820_v6, %v802_v5  ;;  %v803_v11 = vpop.f32.mrf.mxu1  ;;  %v1878_v5 = vld [vmem:[%s2026_s22 + $0x164] sm:$0xf]  ;;  %v1724_v6 = vld [vmem:[%s2026_s22 + $0x168] sm:$0xf0] }
  0xd5   : > { %v804_v16 = vadd.f32 %v803_v11, %v784_v10  ;;  %v1860_v10 = vld [vmem:[%s2026_s22 + $0xd4] sm:$0xf]  ;;  %v1652_v11 = vld [vmem:[%s2026_s22 + $0xd8] sm:$0xf0]  ;;  %v1727_v12 = vor.u32 %v1878_v5, %v1724_v6  ;;  %v1850_v6 = vld [vmem:[%s2026_s22 + $0x84] sm:$0xf] }
  0xd6   : > { %v895_v15 = vmul.f32 %v2144_v9, %v2144_v9  ;;  %v885_v19 = vadd.f32 %v884_v14, %v2144_v9  ;;  %v1876_v14 = vld [vmem:[%s2026_s22 + $0x154] sm:$0xf] }
  0xd7   : > { %864 = vmatpush.bf16.msrb.mxu1 %v1727_v12  ;;  %v1866_v12 = vld [vmem:[%s2026_s22 + $0x104] sm:$0xf] }
  0xd8   : > { %v898_v21 = vadd.f32 %v897_v18, %v895_v15  ;;  %v1716_v15 = vld [vmem:[%s2026_s22 + $0x158] sm:$0xf0]  ;;  %v1655_v18 = vor.u32 %v1860_v10, %v1652_v11  ;;  %v1612_v10 = vld [vmem:[%s2026_s22 + $0x88] sm:$0xf0] }
  0xd9   : > { %v1615_v11 = vor.u32 %v1850_v6, %v1612_v10 }
  0xda   : > { %846 = vmatpush.bf16.msrb.mxu0 %v1655_v18 }
  0xdb   : > { %v822_v17 = vpop.f32.mrf.mxu2 }
  0xdc   : > { %v2155_v20 = vadd.f32 %v822_v17, %v804_v16  ;;  %v1842_v16 = vld [vmem:[%s2026_s22 + $0x44] sm:$0xf]  ;;  %v1580_v17 = vld [vmem:[%s2026_s22 + $0x48] sm:$0xf0] }
  0xde   : > { %v886_v22 = vadd.f32 %v885_v19, %v2155_v20  ;;  %v896_v23 = vmul.f32 %v2155_v20, %v2155_v20  ;;  %v1858_v19 = vld [vmem:[%s2026_s22 + $0xc4] sm:$0xf] }
  0xe0   : > { %v887_v24 = vrot.slane %v886_v22, 4  ;;  %v899_v25 = vadd.f32 %v898_v21, %v896_v23  ;;  %v1644_v21 = vld [vmem:[%s2026_s22 + $0xc8] sm:$0xf0]  ;;  %v1583_v23 = vor.u32 %v1842_v16, %v1580_v17  ;;  %v1896_v16 = vld [vmem:[%s2035_s28 + $0x70] sm:$0xff] }
  0xe2   : > { %v888_v26 = vadd.f32 %v887_v24, %v886_v22  ;;  %v900_v27 = vrot.slane %v899_v25, 4  ;;  %v1719_v22 = vor.u32 %v1876_v14, %v1716_v15  ;;  %v1874_v24 = vld [vmem:[%s2026_s22 + $0x144] sm:$0xf]  ;;  %828 = vmatpush.bf16.msra.mxu3 %v1583_v23  ;;  %v1679_v14 = vor.u32 %v1866_v12, %v1676_v13 }
  0xe4   : > { %v889_v28 = vrot.slane %v888_v26, 2  ;;  %v901_v29 = vadd.f32 %v900_v27, %v899_v25  ;;  %v1708_v25 = vld [vmem:[%s2026_s22 + $0x148] sm:$0xf0]  ;;  %v1572_v27 = vld [vmem:[%s2026_s22 + $0x38] sm:$0xf0]  ;;  %865 = vmatpush.bf16.msrb.mxu1 %v1719_v22  ;;  %v1904_v22 = vld [vmem:[%s2035_s28 + $0xb0] sm:$0xff] }
  0xe6   : > { %v890_v30 = vadd.f32 %v889_v28, %v888_v26  ;;  %v902_v31 = vrot.slane %v901_v29, 2  ;;  %v1840_v26 = vld [vmem:[%s2026_s22 + $0x34] sm:$0xf]  ;;  %v1647_v28 = vor.u32 %v1858_v19, %v1644_v21  ;;  %v1905_v19 = vld [vmem:[%s2035_s28 + $0xb8] sm:$0xff] }
  0xe7   : > { %v1888_v21 = vld [vmem:[%s2035_s28 + $0x30] sm:$0xff] }
  0xe8   : > { %v891_v32 = vrot.slane %v890_v30, 1  ;;  %v903_v36 = vadd.f32 %v902_v31, %v901_v29  ;;  %v1856_v29 = vld [vmem:[%s2026_s22 + $0xb4] sm:$0xf]  ;;  %v1711_v31 = vor.u32 %v1874_v24, %v1708_v25  ;;  %847 = vmatpush.bf16.msrb.mxu0 %v1647_v28  ;;  %v1887_v25 = vld [vmem:[%s2035_s28 + $0x28] sm:$0xff]  ;;  %v1886_v28 = vld [vmem:[%s2035_s28 + $0x20] sm:$0xff] }
  0xea   : > { %v904_v37 = vrot.slane %v903_v36, 1  ;;  %v892_v38 = vadd.f32 %v891_v32, %v890_v30  ;;  %v1636_v30 = vld [vmem:[%s2026_s22 + $0xb8] sm:$0xf0]  ;;  %v1575_v32 = vor.u32 %v1840_v26, %v1572_v27  ;;  %866 = vmatpush.bf16.msrb.mxu1 %v1711_v31  ;;  %v1903_v26 = vld [vmem:[%s2035_s28 + $0xa8] sm:$0xff] }
  0xeb   : > { %v1893_v27 = vld [vmem:[%s2035_s28 + $0x58] sm:$0xff] }
  0xec   : > { %v905_v39 = vadd.f32 %v904_v37, %v903_v36  ;;  %v1872_v36 = vld [vmem:[%s2026_s22 + $0x134] sm:$0xf]  ;;  %v1700_v37 = vld [vmem:[%s2026_s22 + $0x138] sm:$0xf0]  ;;  %829 = vmatpush.bf16.msra.mxu3 %v1575_v32 }
  0xee   : > { %v907_v40 = vsel %vm906_vm0, %v892_v38, %v905_v39  ;;  %v1838_v38 = vld [vmem:[%s2026_s22 + $0x24] sm:$0xf]  ;;  %v1564_v39 = vld [vmem:[%s2026_s22 + $0x28] sm:$0xf0] }
  0xef   : > { %908 = vrot.lane.b32.xlu0 %v907_v40, %s1944_s26  ;;  %v1567_v45 = vor.u32 %v1838_v38, %v1564_v39  ;;  %v1891_v38 = vld [vmem:[%s2035_s28 + $0x48] sm:$0xff] }
  0xf1   : > { %830 = vmatpush.bf16.msra.mxu3 %v1567_v45 }
  0xf5   : > { %831 = vmatpush.bf16.msra.mxu3 %v1559_v49 }
  0xf9   : > { %832 = vmatpush.bf16.msra.mxu3 %v1551_v62  ;;  %v883_v62 = vld [vmem:[%s387_s19] sm:$0x1] }
  0xfc   : > { %833 = vmatmul.bf16.vlgmr.msra.gmra.mxu3 %v2118_v33  ;;  %v1897_v33 = vld [vmem:[%s2035_s28 + $0x78] sm:$0xff] }
  0xfd   : > { %1238 = vmatpush.bf16.msrb.mxu3 %v1897_v33 }
 0x101   : > { %1239 = vmatpush.bf16.msrb.mxu3 %v1896_v16 }
 0x10c   : > { %838 = vmatmul.bf16.gmra.mxu3 %v2131_v52 }
 0x161   : > { %v909_v41 = vpop.permute.xlu0 %908 }
 0x162   : > { %v910_v42 = vadd.f32 %v909_v41, %v907_v40  ;;  %v1639_v40 = vor.u32 %v1856_v29, %v1636_v30  ;;  %v1854_v41 = vld [vmem:[%s2026_s22 + $0xa4] sm:$0xf]  ;;  %v1892_v30 = vld [vmem:[%s2035_s28 + $0x50] sm:$0xff] }
 0x163   : > { %v1902_v29 = vld [vmem:[%s2035_s28 + $0xa0] sm:$0xff] }
 0x164   : > { %911 = vrot.lane.b32.xlu0 %v910_v42, %s1945_s27  ;;  %848 = vmatpush.bf16.msrb.mxu0 %v1639_v40  ;;  %v1884_v40 = vld [vmem:[%s2035_s28 + $0x10] sm:$0xff] }
 0x1d6   : > { %v912_v43 = vpop.permute.xlu0 %911 }
 0x1d7   : > { %v2163_v44 = vadd.f32 %v912_v43, %v910_v42  ;;  %v1628_v42 = vld [vmem:[%s2026_s22 + $0xa8] sm:$0xf0]  ;;  %v1703_v43 = vor.u32 %v1872_v36, %v1700_v37  ;;  %v1885_v36 = vld [vmem:[%s2035_s28 + $0x18] sm:$0xff] }
 0x1d8   : > { %v1631_v48 = vor.u32 %v1854_v41, %v1628_v42  ;;  %v1901_v37 = vld [vmem:[%s2035_s28 + $0x98] sm:$0xff]  ;;  %v1900_v41 = vld [vmem:[%s2035_s28 + $0x90] sm:$0xff] }
 0x1d9   : > { %914 = vrot.lane.b32.xlu1 %v2163_v44, %s1946_s29  ;;  %867 = vmatpush.bf16.msrb.mxu1 %v1703_v43  ;;  %v1890_v43 = vld [vmem:[%s2035_s28 + $0x40] sm:$0xff] }
 0x1da   : > { %849 = vmatpush.bf16.msrb.mxu0 %v1631_v48 }
 0x1dd   : > { %868 = vmatpush.bf16.msrb.mxu1 %v1695_v0 }
 0x1de   : > { %850 = vmatpush.bf16.msrb.mxu0 %v1623_v3 }
 0x1e2   : > { %851 = vmatpush.bf16.msrb.mxu0 %v1615_v11 }
 0x1e5   : > { %852 = vmatmul.bf16.vlgmr.msrb.gmra.mxu0 %v2120_v34  ;;  %v1889_v34 = vld [vmem:[%s2035_s28 + $0x38] sm:$0xff] }
 0x1e6   : > { %1219 = vmatpush.bf16.msrb.mxu2 %v1889_v34  ;;  %1257 = vmatpush.bf16.msra.mxu0 %v1905_v19 }
 0x1ea   : > { %1220 = vmatpush.bf16.msrb.mxu2 %v1888_v21  ;;  %1258 = vmatpush.bf16.msra.mxu0 %v1904_v22 }
 0x1ee   : > { %1221 = vmatpush.bf16.msrb.mxu2 %v1887_v25  ;;  %1259 = vmatpush.bf16.msra.mxu0 %v1903_v26 }
 0x1f2   : > { %1222 = vmatpush.bf16.msrb.mxu2 %v1886_v28  ;;  %1260 = vmatpush.bf16.msra.mxu0 %v1902_v29 }
 0x1f5   : > { %857 = vmatmul.bf16.gmra.mxu0 %v2133_v53 }
 0x1f6   : > { %1223 = vmatpush.bf16.msrb.mxu2 %v1885_v36  ;;  %1261 = vmatpush.bf16.msra.mxu0 %v1901_v37 }
 0x1fa   : > { %1224 = vmatpush.bf16.msrb.mxu2 %v1884_v40  ;;  %1262 = vmatpush.bf16.msra.mxu0 %v1900_v41 }
 0x1fe   : > { %1225 = vmatpush.bf16.msrb.mxu2 %v1883_v46  ;;  %1263 = vmatpush.bf16.msra.mxu0 %v1899_v47 }
 0x24b   : > { %v915_v50 = vpop.permute.xlu1 %914 }
 0x24c   : > { %v916_v51 = vadd.f32 %v915_v50, %v2163_v44  ;;  %v1684_v44 = vld [vmem:[%s2026_s22 + $0x118] sm:$0xf0]  ;;  %v1882_v50 = vld [vmem:[%s2035_s28] sm:$0xff] }
 0x24d   : > { %v1687_v5 = vor.u32 %v1868_v4, %v1684_v44  ;;  %1226 = vmatpush.bf16.msrb.mxu2 %v1882_v50  ;;  %v834_v50 = vpop.f32.mrf.mxu3 }
 0x24e   : > { %917 = vrot.lane.b32.xlu1 %v916_v51, %s1947_s13 }
 0x24f   : > { %869 = vmatpush.bf16.msrb.mxu1 %v1687_v5 }
 0x253   : > { %870 = vmatpush.bf16.msrb.mxu1 %v1679_v14 }
 0x256   : > { %871 = vmatmul.bf16.vlgmr.msrb.gmra.mxu1 %v2122_v35  ;;  %v1895_v35 = vld [vmem:[%s2035_s28 + $0x68] sm:$0xff] }
 0x257   : > { %1906 = vmatpush.bf16.msra.mxu1 %v1905_v19  ;;  %1240 = vmatpush.bf16.msrb.mxu3 %v1895_v35 }
 0x25b   : > { %1907 = vmatpush.bf16.msra.mxu1 %v1904_v22 }
 0x25f   : > { %1908 = vmatpush.bf16.msra.mxu1 %v1903_v26 }
 0x263   : > { %1909 = vmatpush.bf16.msra.mxu1 %v1902_v29 }
 0x266   : > { %876 = vmatmul.bf16.gmra.mxu1 %v2135_v57  ;;  %v1894_v57 = vld [vmem:[%s2035_s28 + $0x60] sm:$0xff] }
 0x267   : > { %1241 = vmatpush.bf16.msrb.mxu3 %v1894_v57  ;;  %1910 = vmatpush.bf16.msra.mxu1 %v1901_v37 }
 0x26b   : > { %1242 = vmatpush.bf16.msrb.mxu3 %v1893_v27  ;;  %1911 = vmatpush.bf16.msra.mxu1 %v1900_v41 }
 0x26f   : > { %1243 = vmatpush.bf16.msrb.mxu3 %v1892_v30  ;;  %1912 = vmatpush.bf16.msra.mxu1 %v1899_v47 }
 0x273   : > { %1244 = vmatpush.bf16.msrb.mxu3 %v1891_v38 }
 0x277   : > { %1245 = vmatpush.bf16.msrb.mxu3 %v1890_v43 }
 0x2c0   : > { %v918_v15 = vpop.permute.xlu1 %917 }
 0x2c1   : > { %v919_v17 = vadd.f32 %v918_v15, %v916_v51  ;;  %v1898_v51 = vld [vmem:[%s2035_s28 + $0x80] sm:$0xff] }
 0x2c2   : > { %1264 = vmatpush.bf16.msra.mxu0 %v1898_v51  ;;  %1913 = vmatpush.bf16.msra.mxu1 %v1898_v51  ;;  %v836_v51 = vpop.f32.mrf.mxu3 }
 0x2c3   : > { %v2225_v18 = vmul.f32 0.001953125, %v919_v17 }
 0x2c5   : > { %v921_v52 = vmul.f32 %v2225_v18, %v2225_v18 }
 0x2c7   : > { %v923_v53 = vrot.slane %v921_v52, 7 }
 0x2c9   : > { %v925_v23 = vsub.f32 %v2225_v18, %v923_v53 }
 0x2cb   : > { %v926_v24 = vadd.f32 1e-05, %v925_v23 }
 0x2cd   : > { %1929 = vrsqrt.f32 %v926_v24  ;;  %vm933_vm2 = vweird.f32 %v926_v24 }
 0x2d3   : > { %v1930_v31 = vpop.eup %1929 }
 0x2d4   : > { %v928_v32 = vmul.f32 %v1930_v31, %v926_v24  ;;  %vm934_vm1 = vweird.f32 %v1930_v31 }
 0x2d5   : > { %vm935_vm3 = vmor %vm933_vm2, %vm934_vm1 }
 0x2d6   : > { %v929_v39 = vmul.f32 %v1930_v31, %v928_v32 }
 0x2d8   : > { %v930_v42 = vmul.f32 0.5, %v929_v39 }
 0x2da   : > { %v931_v45 = vsub.f32 1.5, %v930_v42 }
 0x2dc   : > { %v932_v48 = vmul.f32 %v1930_v31, %v931_v45 }
 0x2de   : > { %v936_v49 = vsel %vm935_vm3, %v1930_v31, %v932_v48 }
 0x2df   : > { %938 = vst [vmem:[#allocation1] sm:$0xff] %v936_v49 }
 0x2e6   : > { %v940_v60 = vld [vmem:[#allocation1 + $0x1] ss:$9 sm:$0xff] }
 0x2e7   : > { %v942_v61 = vmul.f32 %v940_v60, %v882_v58  ;;  %v853_v58 = vpop.f32.mrf.mxu0  ;;  %v839_v60 = vpop.f32.mrf.mxu3 }
 0x2e9   : > { %v944_v63 = vperm.slane %v942_v61, 0  ;;  %v950_v0 = vmul.f32 %v942_v61, %v2225_v18  ;;  %v872_v61 = vpop.f32.mrf.mxu1 }
 0x2eb   : > { %v951_v1 = vsub.f32 %v883_v62, %v950_v0  ;;  %v946_v2 = vmul.f32 %v944_v63, %v2142_v8  ;;  %v947_v3 = vmul.f32 %v944_v63, %v2140_v7  ;;  %v948_v4 = vmul.f32 %v944_v63, %v2144_v9 }
 0x2ec   : > { %v949_v44 = vmul.f32 %v944_v63, %v2155_v20 }
 0x2ed   : > { %v953_v5 = vperm.slane %v951_v1, 0 }
 0x2ef   : > { %v955_v6 = vadd.f32 %v953_v5, %v946_v2  ;;  %v956_v10 = vadd.f32 %v953_v5, %v947_v3  ;;  %v957_v11 = vadd.f32 %v953_v5, %v948_v4  ;;  %v958_v12 = vadd.f32 %v953_v5, %v949_v44  ;;  %v855_v62 = vpop.f32.mrf.mxu0  ;;  %v841_v63 = vpop.f32.mrf.mxu3 }
 0x2f0   : > { %v854_v5 = vadd.f32 %v853_v58, %v834_v50 }
 0x2f1   : > { %v959_v13 = vmax.f32 %v955_v6, 0.0  ;;  %v960_v14 = vmax.f32 %v956_v10, 0.0  ;;  %v961_v33 = vmax.f32 %v957_v11, 0.0  ;;  %v962_v15 = vmax.f32 %v958_v12, 0.0  ;;  %v874_v0 = vpop.f32.mrf.mxu1 }
 0x2f2   : > { %v856_v6 = vadd.f32 %v855_v62, %v836_v51  ;;  %v2267_v12 = vadd.f32 %v872_v61, %v854_v5 }
 0x2f3   : > { %963 = vst [vmem:[#allocation2 + $0x1] sm:$0xff] %v959_v13  ;;  %v979_v16 = vpack.c.bf16 %v959_v13, %v959_v13  ;;  %v980_v17 = vpack.c.bf16 %v960_v14, %v960_v14  ;;  %v981_v29 = vpack.c.bf16 %v961_v33, %v961_v33  ;;  %v982_v30 = vpack.c.bf16 %v962_v15, %v962_v15 }
 0x2f4   : > { %964 = vst [vmem:[#allocation2 + $0x9] sm:$0xff] %v960_v14  ;;  %v2269_v13 = vadd.f32 %v874_v0, %v856_v6 }
 0x2f5   : > { %965 = vst [vmem:[#allocation2 + $0x19] sm:$0xff] %v961_v33  ;;  %v1007_v8 = vunpack.c.l.b16 %v979_v16  ;;  %v1008_v7 = vunpack.c.l.b16 %v980_v17  ;;  %v1009_v39 = vunpack.c.l.b16 %v981_v29  ;;  %v1010_v40 = vunpack.c.l.b16 %v982_v30 }
 0x2f6   : > { %966 = vst [vmem:[#allocation2 + $0x21] sm:$0xff] %v962_v15  ;;  %v1363_v16 = vmul.f32 %v2267_v12, %v2267_v12  ;;  %v1364_v17 = vmul.f32 %v2269_v13, %v2269_v13 }
 0x2f7   : > { %v1011_v9 = vpack.c.b16 %v1008_v7, %v1007_v8  ;;  %v1012_v43 = vpack.c.b16 %v1010_v40, %v1009_v39  ;;  %v858_v1 = vpop.f32.mrf.mxu0 }
 0x2f8   : > { %v859_v14 = vadd.f32 %v858_v1, %v839_v60 }
 0x2f9   : > { %1246 = vmatmul.bf16.vlgmr.msrb.gmra.mxu3 %v1011_v9  ;;  %v877_v3 = vpop.f32.mrf.mxu1 }
 0x2fa   : > { %v967_v20 = vld [vmem:[#allocation2] sm:$0xff]  ;;  %v2275_v8 = vadd.f32 %v877_v3, %v859_v14 }
 0x2fb   : > { %v968_v18 = vld [vmem:[#allocation2 + $0x8] sm:$0xff]  ;;  %v971_v34 = vpack.c.bf16 %v967_v20, %v967_v20 }
 0x2fc   : > { %v983_v19 = vld [vmem:[#allocation2 + $0x2] sm:$0xff]  ;;  %v984_v35 = vld [vmem:[#allocation2 + $0xa] sm:$0xff]  ;;  %v972_v52 = vpack.c.bf16 %v968_v18, %v968_v18  ;;  %v969_v41 = vld [vmem:[#allocation2 + $0x18] sm:$0xff]  ;;  %v1354_v18 = vadd.f32 %v2269_v13, %v2267_v12 }
 0x2fd   : > { %v987_v53 = vpack.c.bf16 %v983_v19, %v983_v19  ;;  %v988_v21 = vpack.c.bf16 %v984_v35, %v984_v35  ;;  %v995_v22 = vunpack.c.l.b16 %v971_v34  ;;  %v985_v57 = vld [vmem:[#allocation2 + $0x1a] sm:$0xff]  ;;  %v986_v23 = vld [vmem:[#allocation2 + $0x22] sm:$0xff]  ;;  %v973_v45 = vpack.c.bf16 %v969_v41, %v969_v41 }
 0x2fe   : > { %v996_v24 = vunpack.c.l.b16 %v972_v52  ;;  %v989_v27 = vpack.c.bf16 %v985_v57, %v985_v57  ;;  %v990_v28 = vpack.c.bf16 %v986_v23, %v986_v23  ;;  %v970_v42 = vld [vmem:[#allocation2 + $0x20] sm:$0xff]  ;;  %v1367_v34 = vadd.f32 %v1364_v17, %v1363_v16 }
 0x2ff   : > { %v1019_v25 = vunpack.c.l.b16 %v987_v53  ;;  %v1020_v26 = vunpack.c.l.b16 %v988_v21  ;;  %v974_v46 = vpack.c.bf16 %v970_v42, %v970_v42  ;;  %v997_v47 = vunpack.c.l.b16 %v973_v45  ;;  %v860_v4 = vpop.f32.mrf.mxu0 }
 0x300   : > { %v999_v31 = vpack.c.b16 %v996_v24, %v995_v22  ;;  %v1021_v36 = vunpack.c.l.b16 %v989_v27  ;;  %v1022_v37 = vunpack.c.l.b16 %v990_v28  ;;  %v861_v7 = vadd.f32 %v860_v4, %v841_v63 }
 0x301   : > { %v1023_v32 = vpack.c.b16 %v1020_v26, %v1019_v25  ;;  %v998_v48 = vunpack.c.l.b16 %v974_v46  ;;  %v879_v11 = vpop.f32.mrf.mxu1  ;;  %v1365_v19 = vmul.f32 %v2275_v8, %v2275_v8  ;;  %v1355_v24 = vadd.f32 %v1354_v18, %v2275_v8 }
 0x302   : > { %1227 = vmatmul.bf16.vlgmr.msrb.gmra.mxu2 %v999_v31  ;;  %v1024_v38 = vpack.c.b16 %v1022_v37, %v1021_v36  ;;  %v2281_v35 = vadd.f32 %v879_v11, %v861_v7 }
 0x303   : > { %1265 = vmatmul.bf16.vlgmr.msra.gmra.mxu0 %v1023_v32  ;;  %v1000_v49 = vpack.c.b16 %v998_v48, %v997_v47  ;;  %v1368_v25 = vadd.f32 %v1367_v34, %v1365_v19 }
 0x304   : > { %1270 = vmatmul.bf16.vlgmr.msra.gmra.mxu1 %v1024_v38  ;;  %v1366_v26 = vmul.f32 %v2281_v35, %v2281_v35  ;;  %v1356_v30 = vadd.f32 %v1355_v24, %v2281_v35 }
 0x306   : > { %v1369_v31 = vadd.f32 %v1368_v25, %v1366_v26  ;;  %v1357_v46 = vrot.slane %v1356_v30, 4 }
 0x308   : > { %v1370_v47 = vrot.slane %v1369_v31, 4  ;;  %v1358_v60 = vadd.f32 %v1357_v46, %v1356_v30 }
 0x309   : > { %1251 = vmatmul.bf16.gmra.mxu3 %v1012_v43 }
 0x30a   : > { %v1371_v61 = vadd.f32 %v1370_v47, %v1369_v31 }
 0x312   : > { %1232 = vmatmul.bf16.gmra.mxu2 %v1000_v49 }
 0x37c   : > { %v1247_v2 = vpop.f32.mrf.mxu3 }
 0x380   : > { %v1266_v33 = vpop.f32.mrf.mxu0 }
 0x381   : > { %v1271_v52 = vpop.f32.mrf.mxu1 }
 0x384   : > { %v1249_v10 = vpop.f32.mrf.mxu3 }
 0x385   : > { %v1228_v44 = vpop.f32.mrf.mxu2 }
 0x386   : > { %v1248_v21 = vadd.f32 %v1247_v2, %v1228_v44  ;;  %v1359_v2 = vrot.slane %v1358_v60, 2  ;;  %v1372_v44 = vrot.slane %v1371_v61, 2 }
 0x388   : > { %v1268_v57 = vpop.f32.mrf.mxu0  ;;  %v2288_v27 = vadd.f32 %v1266_v33, %v1248_v21  ;;  %v1360_v11 = vadd.f32 %v1359_v2, %v1358_v60  ;;  %v1373_v14 = vadd.f32 %v1372_v44, %v1371_v61 }
 0x389   : > { %v1273_v41 = vpop.f32.mrf.mxu1 }
 0x38a   : > { %v1287_v37 = vmul.f32 %v2288_v27, %v2288_v27  ;;  %v1361_v17 = vrot.slane %v1360_v11, 1  ;;  %v1374_v7 = vrot.slane %v1373_v14, 1 }
 0x38c   : > { %v1252_v9 = vpop.f32.mrf.mxu3 }
 0x38d   : > { %v1230_v15 = vpop.f32.mrf.mxu2 }
 0x38e   : > { %v1250_v20 = vadd.f32 %v1249_v10, %v1230_v15 }
 0x390   : > { %v2283_v23 = vadd.f32 %v1268_v57, %v1250_v20  ;;  %v1375_v20 = vadd.f32 %v1374_v7, %v1373_v14  ;;  %v1352_v14 = vld [vmem:[%s2369_s7] sm:$0x1] }
 0x391   : > { %v1353_v7 = vld [vmem:[%s2370_s8] sm:$0x1] }
 0x392   : > { %v1288_v29 = vmul.f32 %v2283_v23, %v2283_v23  ;;  %v1278_v38 = vadd.f32 %v2283_v23, %v2288_v27 }
 0x394   : > { %v1254_v36 = vpop.f32.mrf.mxu3  ;;  %v1291_v42 = vadd.f32 %v1288_v29, %v1287_v37 }
 0x395   : > { %v1233_v53 = vpop.f32.mrf.mxu2 }
 0x396   : > { %v1253_v22 = vadd.f32 %v1252_v9, %v1233_v53  ;;  %v1362_v9 = vadd.f32 %v1361_v17, %v1360_v11  ;;  %v1277_v17 = vld [vmem:[%s393_s14] sm:$0x1] }
 0x398   : > { %v2290_v28 = vadd.f32 %v1271_v52, %v1253_v22  ;;  %v1376_v18 = vsel %vm906_vm0, %v1362_v9, %v1375_v20 }
 0x39a   : > { %v1289_v39 = vmul.f32 %v2290_v28, %v2290_v28  ;;  %v1279_v43 = vadd.f32 %v1278_v38, %v2290_v28 }
 0x39c   : > { %v1292_v48 = vadd.f32 %v1291_v42, %v1289_v39 }
 0x39d   : > { %v1235_v32 = vpop.f32.mrf.mxu2 }
 0x39e   : > { %v1255_v40 = vadd.f32 %v1254_v36, %v1235_v32 }
 0x3a0   : > { %v2302_v45 = vadd.f32 %v1273_v41, %v1255_v40 }
 0x3a2   : > { %v1280_v49 = vadd.f32 %v1279_v43, %v2302_v45  ;;  %v1290_v50 = vmul.f32 %v2302_v45, %v2302_v45 }
 0x3a4   : > { %v1281_v51 = vrot.slane %v1280_v49, 4  ;;  %v1293_v58 = vadd.f32 %v1292_v48, %v1290_v50 }
 0x3a6   : > { %v1282_v62 = vadd.f32 %v1281_v51, %v1280_v49  ;;  %v1294_v63 = vrot.slane %v1293_v58, 4 }
 0x3a8   : > { %v1283_v0 = vrot.slane %v1282_v62, 2  ;;  %v1295_v1 = vadd.f32 %v1294_v63, %v1293_v58 }
 0x3aa   : > { %v1284_v3 = vadd.f32 %v1283_v0, %v1282_v62  ;;  %v1296_v4 = vrot.slane %v1295_v1, 2 }
 0x3ac   : > { %v1285_v5 = vrot.slane %v1284_v3, 1  ;;  %v1297_v6 = vadd.f32 %v1296_v4, %v1295_v1 }
 0x3ae   : > { %v1298_v10 = vrot.slane %v1297_v6, 1  ;;  %v1286_v33 = vadd.f32 %v1285_v5, %v1284_v3 }
 0x3b0   : > { %v1299_v15 = vadd.f32 %v1298_v10, %v1297_v6  ;;  %v1276_v10 = vld [vmem:[%s390_s25] sm:$0x1] }
 0x3b2   : > { %v1300_v16 = vsel %vm906_vm0, %v1286_v33, %v1299_v15 }
 0x3b3   : > { %1301 = vrot.lane.b32.xlu2 %v1300_v16, %s1944_s26 }
 0x3bb   : > { %1377 = vrot.lane.b32.xlu2 %v1376_v18, %s1944_s26 }
 0x40d   : > { %v1302_v34 = vpop.permute.xlu2 %1301 }
 0x40e   : > { %v1303_v19 = vadd.f32 %v1302_v34, %v1300_v16 }
 0x410   : > { %1304 = vrot.lane.b32.xlu0 %v1303_v19, %s1945_s27 }
 0x415   : > { %v1378_v52 = vpop.permute.xlu2 %1377 }
 0x416   : > { %v1379_v53 = vadd.f32 %v1378_v52, %v1376_v18  ;;  %v1436_v18 = vstv %s1435_s23 }
 0x418   : > { %1380 = vrot.lane.b32.xlu1 %v1379_v53, %s1945_s27 }
 0x482   : > { %v1305_v21 = vpop.permute.xlu0 %1304 }
 0x483   : > { %v1306_v22 = vadd.f32 %v1305_v21, %v1303_v19  ;;  %v1437_v21 = vmul.f32 %v1436_v18, %v2088_v54 }
 0x485   : > { %1307 = vrot.lane.b32.xlu2 %v1306_v22, %s1946_s29 }
 0x48a   : > { %v1381_v57 = vpop.permute.xlu1 %1380 }
 0x48b   : > { %v1382_v24 = vadd.f32 %v1381_v57, %v1379_v53  ;;  %v1430_v53 = vstv %s1429_s16 }
 0x48d   : > { %1383 = vrot.lane.b32.xlu0 %v1382_v24, %s1946_s29 }
 0x4df   : > { %v1308_v25 = vpop.permute.xlu2 %1307 }
 0x4e0   : > { %v1309_v26 = vadd.f32 %v1308_v25, %v1306_v22 }
 0x4e2   : > { %1310 = vrot.lane.b32.xlu1 %v1309_v26, %s1947_s13 }
 0x4ff   : > { %v1384_v29 = vpop.permute.xlu0 %1383 }
 0x500   : > { %v1385_v30 = vadd.f32 %v1384_v29, %v1382_v24 }
 0x502   : > { %1386 = vrot.lane.b32.xlu2 %v1385_v30, %s1947_s13 }
 0x554   : > { %v1311_v31 = vpop.permute.xlu1 %1310 }
 0x555   : > { %v1312_v32 = vadd.f32 %v1311_v31, %v1309_v26  ;;  %v1439_v31 = vmul.f32 %v1436_v18, %v2092_v56 }
 0x557   : > { %v1313_v36 = vmul.f32 0.001953125, %v1312_v32  ;;  %v1440_v32 = vmul.f32 %v1436_v18, %v2097_v59 }
 0x559   : > { %v1314_v37 = vmul.f32 %v1313_v36, %v1313_v36 }
 0x55b   : > { %v1316_v38 = vrot.slane %v1314_v37, 7 }
 0x55c   : > { %v1387_v39 = vpop.permute.xlu2 %1386 }
 0x55d   : > { %v1318_v40 = vsub.f32 %v1313_v36, %v1316_v38  ;;  %v1388_v41 = vadd.f32 %v1387_v39, %v1385_v30  ;;  %v1438_v30 = vmul.f32 %v1436_v18, %v2090_v55 }
 0x55f   : > { %v1319_v42 = vadd.f32 1e-05, %v1318_v40  ;;  %v1389_v43 = vmul.f32 0.001953125, %v1388_v41 }
 0x561   : > { %1931 = vrsqrt.f32 %v1319_v42  ;;  %v1390_v46 = vmul.f32 %v1389_v43, %v1389_v43  ;;  %vm1326_vm5 = vweird.f32 %v1319_v42 }
 0x563   : > { %v1392_v47 = vrot.slane %v1390_v46, 7 }
 0x565   : > { %v1394_v48 = vsub.f32 %v1389_v43, %v1392_v47 }
 0x567   : > { %v1932_v49 = vpop.eup %1931  ;;  %v1395_v51 = vadd.f32 1e-05, %v1394_v48 }
 0x568   : > { %v1321_v50 = vmul.f32 %v1932_v49, %v1319_v42  ;;  %vm1327_vm4 = vweird.f32 %v1932_v49 }
 0x569   : > { %1933 = vrsqrt.f32 %v1395_v51  ;;  %vm1328_vm6 = vmor %vm1326_vm5, %vm1327_vm4  ;;  %vm1402_vm8 = vweird.f32 %v1395_v51 }
 0x56a   : > { %v1322_v58 = vmul.f32 %v1932_v49, %v1321_v50 }
 0x56c   : > { %v1323_v60 = vmul.f32 0.5, %v1322_v58 }
 0x56e   : > { %v1324_v61 = vsub.f32 1.5, %v1323_v60 }
 0x56f   : > { %v1934_v62 = vpop.eup %1933 }
 0x570   : > { %v1325_v63 = vmul.f32 %v1932_v49, %v1324_v61  ;;  %v1397_v0 = vmul.f32 %v1934_v62, %v1395_v51  ;;  %vm1403_vm7 = vweird.f32 %v1934_v62 }
 0x571   : > { %vm1404_vm9 = vmor %vm1402_vm8, %vm1403_vm7 }
 0x572   : > { %v1329_v1 = vsel %vm1328_vm6, %v1932_v49, %v1325_v63  ;;  %v1398_v2 = vmul.f32 %v1934_v62, %v1397_v0 }
 0x573   : > { %1331 = vst [vmem:[#allocation1] sm:$0xff] %v1329_v1 }
 0x574   : > { %v1399_v3 = vmul.f32 0.5, %v1398_v2 }
 0x576   : > { %v1400_v4 = vsub.f32 1.5, %v1399_v3 }
 0x578   : > { %v1401_v44 = vmul.f32 %v1934_v62, %v1400_v4 }
 0x57a   : > { %v1333_v5 = vld [vmem:[#allocation1 + $0x1] ss:$9 sm:$0xff]  ;;  %v1405_v6 = vsel %vm1404_vm9, %v1934_v62, %v1401_v44 }
 0x57b   : > { %1407 = vst [vmem:[#allocation1] sm:$0xff] %v1405_v6  ;;  %v1335_v11 = vmul.f32 %v1333_v5, %v1276_v10 }
 0x57d   : > { %v1343_v15 = vmul.f32 %v1335_v11, %v1313_v36  ;;  %v1337_v52 = vperm.slane %v1335_v11, 0 }
 0x57f   : > { %v1344_v34 = vsub.f32 %v1277_v17, %v1343_v15 }
 0x581   : > { %v1346_v29 = vperm.slane %v1344_v34, 0 }
 0x582   : > { %v1409_v33 = vld [vmem:[#allocation1 + $0x1] ss:$9 sm:$0xff] }
 0x583   : > { %v1411_v16 = vmul.f32 %v1409_v33, %v1352_v14 }
 0x585   : > { %v1413_v9 = vperm.slane %v1411_v16, 0  ;;  %v1419_v20 = vmul.f32 %v1411_v16, %v1389_v43 }
 0x587   : > { %v1420_v19 = vsub.f32 %v1353_v7, %v1419_v20  ;;  %v1415_v22 = vmul.f32 %v1413_v9, %v2267_v12  ;;  %v1416_v57 = vmul.f32 %v1413_v9, %v2269_v13  ;;  %v1417_v24 = vmul.f32 %v1413_v9, %v2275_v8 }
 0x588   : > { %v1418_v25 = vmul.f32 %v1413_v9, %v2281_v35  ;;  %v1339_v12 = vmul.f32 %v1337_v52, %v2288_v27  ;;  %v1340_v13 = vmul.f32 %v1337_v52, %v2283_v23  ;;  %v1341_v8 = vmul.f32 %v1337_v52, %v2290_v28 }
 0x589   : > { %v1422_v26 = vperm.slane %v1420_v19, 0  ;;  %v1342_v35 = vmul.f32 %v1337_v52, %v2302_v45 }
 0x58a   : > { %v1348_v42 = vadd.f32 %v1346_v29, %v1339_v12  ;;  %v1349_v56 = vadd.f32 %v1346_v29, %v1340_v13  ;;  %v1350_v43 = vadd.f32 %v1346_v29, %v1341_v8 }
 0x58b   : > { %v1424_v36 = vadd.f32 %v1422_v26, %v1415_v22  ;;  %v1425_v37 = vadd.f32 %v1422_v26, %v1416_v57  ;;  %v1426_v38 = vadd.f32 %v1422_v26, %v1417_v24  ;;  %v1427_v54 = vadd.f32 %v1422_v26, %v1418_v25 }
 0x58c   : > { %v1351_v59 = vadd.f32 %v1346_v29, %v1342_v35 }
 0x58d   : > { %v1431_v39 = vmul.f32 %v1430_v53, %v1424_v36  ;;  %v1432_v40 = vmul.f32 %v1430_v53, %v1425_v37  ;;  %v1433_v41 = vmul.f32 %v1430_v53, %v1426_v38  ;;  %v1434_v55 = vmul.f32 %v1430_v53, %v1427_v54 }
 0x58f   : > { %v1441_v46 = vadd.f32 %v1437_v21, %v1431_v39  ;;  %v1442_v47 = vadd.f32 %v1438_v30, %v1432_v40  ;;  %v1443_v48 = vadd.f32 %v1439_v31, %v1433_v41  ;;  %v1444_v49 = vadd.f32 %v1440_v32, %v1434_v55 }
 0x591   : > { %v1445_v50 = vadd.f32 %v1441_v46, %v1348_v42  ;;  %v1446_v27 = vadd.f32 %v1442_v47, %v1349_v56  ;;  %v1447_v51 = vadd.f32 %v1443_v48, %v1350_v43  ;;  %v1448_v23 = vadd.f32 %v1444_v49, %v1351_v59 }
 0x593   : > { %v1449_v58 = vmax.f32 %v1445_v50, 0.0  ;;  %v1450_v28 = vmax.f32 %v1446_v27, 0.0  ;;  %v1451_v60 = vmax.f32 %v1447_v51, 0.0  ;;  %v1452_v45 = vmax.f32 %v1448_v23, 0.0 }
 0x595   : > { %1453 = vst [vmem:[#allocation3 + $0x10] sm:$0xff] %v1449_v58 }
 0x596   : > { %1454 = vst [vmem:[#allocation3] sm:$0xff] %v1450_v28 }
 0x597   : > { %1455 = vst [vmem:[#allocation3 + $0x18] sm:$0xff] %v1451_v60 }
 0x598   : > { %1456 = vst [vmem:[#allocation3 + $0x8] sm:$0xff] %v1452_v45 }
 0x599   : > { %1457 = vst [vmem:[%s2371_s9] sm:$0xff] %v1449_v58 }
 0x59a   : > { %1458 = vst [vmem:[%s2371_s9 + $0x8] sm:$0xff] %v1450_v28 }
 0x59b   : > { %1459 = vst [vmem:[%s2371_s9 + $0x10] sm:$0xff] %v1451_v60 }
 0x59c   : > { %1460 = vst [vmem:[%s2371_s9 + $0x18] sm:$0xff] %v1452_v45 }
 0x59d PF: > { %s19_s30 = sadd.s32 1, %s1941_s30  }
 0x59e   : > { %p16_p6 = scmp.ge.s32.totalorder %s19_s30, 4  }
 0x5a0   :  { %18 = sbr.rel (!%p16_p6) target bundleno = 1 (0x1), region = 104 }

</bundles_post_ra>
